<compile_context>
chip_gen: v5e
topology: v5e:2x2
jax: 0.10.0
libtpu: 0.0.40
codegen_flags: <defaults>
</compile_context>

<pallas_src>
import random
from functools import partial

import numpy as np
import jax
import jax.numpy as jnp
from jax.experimental import pallas as pl
from jax.experimental.pallas import tpu as pltpu


# ----------------------------- Pallas kernel --------------------------------

def _ranker_kernel(scores_ref, cand_ref, out_ref, acc_ref, *,
                   ks, mrr_ks, batch_size, tile_b):
    """One batch tile per grid step; metric sums accumulated in SMEM."""
    step = pl.program_id(0)
    num_metrics = 2 * len(ks) + len(mrr_ks) + 1

    @pl.when(step == 0)
    def _init():
        for i in range(num_metrics):
            acc_ref[i] = 0.0

    scores = scores_ref[...].astype(jnp.float32)        # [TB, C] (bf16 -> f32)
    cand = cand_ref[...]                                 # [TB, N] int32
    tb, c = scores.shape
    n_cand = cand.shape[1]

    # Class-index iota built ONCE per step (JAX does not CSE broadcast_in_dim).
    col = jax.lax.broadcasted_iota(jnp.int32, (tb, c), 1)

    # Per-candidate gather: compare + select + lane reduce.  Keeps the live set
    # at one (TB, C) tile instead of a (TB, N, C) one-hot blow-up.
    # TODO(synk): no bounds check on cand; an index >= C silently gathers 0.0.
    cols = []
    for n in range(n_cand):
        sel = jnp.where(cand[:, n:n + 1] == col, scores, 0.0)      # [TB, C]
        cols.append(jnp.sum(sel, axis=-1, keepdims=True))          # [TB, 1]
    sampled = jnp.concatenate(cols, axis=1)                         # [TB, N]

    true_s = sampled[:, 0:1]                                        # [TB, 1]

    # Cross-entropy with target index 0 (per-row term; mean taken at finalize).
    m = jnp.max(sampled, axis=-1, keepdims=True)
    lse = m + jnp.log(jnp.sum(jnp.exp(sampled - m), axis=-1, keepdims=True))
    loss_per_row = lse - true_s                                     # [TB, 1]

    # Rank of the true item after a descending sort.  Candidate indices are
    # distinct, so the rank equals the count of strictly larger scores.
    # TODO(synk): torch.sort tie ordering for exactly-equal scores is not
    # reproduced; ties between distinct candidates are broken in favour of the
    # true item here.
    ranks = jnp.sum((sampled > true_s).astype(jnp.float32),
                    axis=-1, keepdims=True)                         # [TB, 1]

    # Mask padded batch rows (B % TB != 0) out of every sum.
    row = jax.lax.broadcasted_iota(jnp.int32, (tb, 1), 0) + step * tile_b
    valid = (row < batch_size).astype(jnp.float32)                  # [TB, 1]

    # Hoisted rank-derived quantities; approx reciprocals run on the EUP slot.
    #   ndcg discount: 1/log2(rank+2) = ln(2) / ln(rank+2)
    #   mrr term:      1/(rank+1)
    ln2 = float(np.log(2.0))
    disc = pl.reciprocal(jnp.log(ranks + 2.0), approx=True) * ln2
    rr = pl.reciprocal(ranks + 1.0, approx=True)

    # Hit masks computed once per unique k, reused across recall/ndcg/mrr.
    hits = {k: (ranks < float(k)).astype(jnp.float32) * valid
            for k in sorted(set(ks) | set(mrr_ks))}

    idx = 0
    for k in ks:
        acc_ref[idx] += jnp.sum(hits[k])                 # recall@k partial sum
        acc_ref[idx + 1] += jnp.sum(hits[k] * disc)      # ndcg@k partial sum
        idx += 2
    for k in mrr_ks:
        acc_ref[idx] += jnp.sum(hits[k] * rr)            # mrr@k partial sum
        idx += 1
    acc_ref[idx] += jnp.sum(loss_per_row * valid)        # CE loss partial sum

    @pl.when(step == pl.num_programs(0) - 1)
    def _finalize():
        inv_b = 1.0 / float(batch_size)
        for i in range(num_metrics):
            out_ref[i] = acc_ref[i] * inv_b


def ranker_metrics(scores, cand, ks=(1, 5, 10), mrr_ks=(3, 10), tile_b=None):
    """scores: [B, C] (f32 or bf16), cand: [B, 1+num_negatives] int32
       -> [2*len(ks)+len(mrr_ks)+1] f32 metrics, same order as Ranker.forward."""
    B, C = scores.shape
    N = cand.shape[1]
    num_metrics = 2 * len(ks) + len(mrr_ks) + 1

    if tile_b is None:
        tile_b = min(512, B)
    # Multiple of 16 keeps the bf16 (16, 128) sublane-packing constraint happy
    # (and 16 % 8 == 0 covers f32/int32 as well).
    tile_b = max(16, (tile_b // 16) * 16)

    num_tiles = pl.cdiv(B, tile_b)
    b_padded = num_tiles * tile_b
    if b_padded != B:
        scores = jnp.pad(scores, ((0, b_padded - B), (0, 0)))
        cand = jnp.pad(cand, ((0, b_padded - B), (0, 0)))

    kernel = partial(_ranker_kernel, ks=tuple(ks), mrr_ks=tuple(mrr_ks),
                     batch_size=B, tile_b=tile_b)

    grid_spec = pltpu.PrefetchScalarGridSpec(
        num_scalar_prefetch=0,
        grid=(num_tiles,),
        in_specs=[
            pl.BlockSpec((tile_b, C), lambda i: (i, 0)),   # scores tile (VMEM)
            pl.BlockSpec((tile_b, N), lambda i: (i, 0)),   # candidate tile
        ],
        out_specs=pl.BlockSpec((num_metrics,), lambda i: (0,),
                               memory_space=pltpu.MemorySpace.SMEM),
        scratch_shapes=[pltpu.SMEM((num_metrics,), jnp.float32)],
    )

    return pl.pallas_call(
        kernel,
        out_shape=jax.ShapeDtypeStruct((num_metrics,), jnp.float32),
        grid_spec=grid_spec,
        compiler_params=pltpu.CompilerParams(
            # batch axis carries the SMEM accumulator -> "arbitrary".
            # TODO(synk): per-core partial sums would enable 2-TC v7x sharding.
            dimension_semantics=("arbitrary",),
            vmem_limit_bytes=32 * 1024 * 1024,
        ),
    )(scores, cand)


# ---------------- host-side glue (mirrors the PyTorch module) ----------------

def get_last_non_zero(lst):
    for item in reversed(lst):
        if item != 0:
            return item
    return None


def build_candidates(labels_np, num_classes, num_negatives, seed=0):
    """Replicates Ranker.sample_negatives + true-item extraction (Python glue)."""
    random.seed(seed)
    rows = []
    for i in range(labels_np.shape[0]):
        seq = labels_np[i].tolist()
        true_item = get_last_non_zero(seq)
        candidates = sorted(set(range(num_classes)) - set(seq))
        negatives = random.sample(candidates, num_negatives)
        rows.append([true_item] + negatives)
    return np.asarray(rows, dtype=np.int32)


def reference_metrics(scores_np, cand_np, ks, mrr_ks):
    sampled = np.take_along_axis(scores_np, cand_np, axis=1)
    true_s = sampled[:, :1]
    m = sampled.max(axis=1, keepdims=True)
    lse = m + np.log(np.exp(sampled - m).sum(axis=1, keepdims=True))
    loss = float(np.mean(lse - true_s))
    ranks = (sampled > true_s).sum(axis=1).astype(np.float32)
    res = []
    for k in ks:
        hit = (ranks < k).astype(np.float32)
        res.append(hit.mean())
        res.append((hit / np.log2(ranks + 2.0)).mean())
    for k in mrr_ks:
        hit = (ranks < k).astype(np.float32)
        res.append((hit / (ranks + 1.0)).mean())
    res.append(loss)
    return np.asarray(res, dtype=np.float32)


if __name__ == "__main__":
    B, C, L = 24, 256, 8        # batch, num_classes, num_labels (seq length)
    NUM_NEGATIVES = 29
    KS = (1, 5, 10)
    MRR_KS = (3, 10)
    TILE_B = 16                 # 2 grid steps, last tile padded (exercises mask)

    key = jax.random.PRNGKey(0)
    k_scores, k_labels = jax.random.split(key)

    scores = jax.random.normal(k_scores, (B, C), dtype=jnp.float32).astype(jnp.bfloat16)
    labels = jax.random.randint(k_labels, (B, L), 1, C, dtype=jnp.int32)
    labels_np = np.array(labels)          # writable copy (np.asarray of a jax array is read-only)
    labels_np[::2, -1] = 0                # some rows end with padding -> exercise get_last_non_zero

    cand_np = build_candidates(labels_np, C, NUM_NEGATIVES, seed=0)   # [B, 30]
    cand = jnp.asarray(cand_np, dtype=jnp.int32)

    out = ranker_metrics(scores, cand, ks=KS, mrr_ks=MRR_KS, tile_b=TILE_B)
    out = jax.block_until_ready(out)

    # Reference computed on exactly the bf16-rounded scores the kernel reads.
    scores_f32_np = np.asarray(scores.astype(jnp.float32))
    ref = reference_metrics(scores_f32_np, cand_np, KS, MRR_KS)
    # Tolerance loosened slightly for the EUP approx reciprocals in ndcg/mrr.
    np.testing.assert_allclose(np.asarray(out), ref, rtol=5e-3, atol=1e-3)

    print("KERNEL_OK")
</pallas_src>

<mosaic_0001>
module attributes {stable_mosaic.version = 11 : i64} {
  func.func @_ranker_kernel(%arg0: i32, %arg1: memref<16x256xbf16, #tpu.memory_space<vmem>>, %arg2: memref<16x30xi32, #tpu.memory_space<vmem>>, %arg3: memref<9xf32, #tpu.memory_space<smem>>, %arg4: memref<9xf32, #tpu.memory_space<smem>>) attributes {dimension_semantics = [#tpu.dimension_semantics<arbitrary>], iteration_bounds = array<i64: 2>, scalar_prefetch = 0 : i64, scratch_operands = 1 : i64, tpu.core_type = #tpu.core_type<tc>, window_params = [{transform_indices = @transform_0, window_bounds = array<i64: 16, 256>}, {transform_indices = @transform_1, window_bounds = array<i64: 16, 30>}, {transform_indices = @transform_2, window_bounds = array<i64: 9>}]} {
    %c0_i32 = arith.constant 0 : i32
    %0 = arith.cmpi eq, %arg0, %c0_i32 : i32
    %1 = arith.extui %0 : i1 to i32
    %c0_i32_0 = arith.constant 0 : i32
    %2 = arith.cmpi ne, %1, %c0_i32_0 : i32
    scf.if %2 {
      %cst_93 = arith.constant 0.000000e+00 : f32
      %c0_94 = arith.constant 0 : index
      %346 = memref.load %arg4[%c0_94] : memref<9xf32, #tpu.memory_space<smem>>
      memref.store %cst_93, %arg4[%c0_94] : memref<9xf32, #tpu.memory_space<smem>>
      %cst_95 = arith.constant 0.000000e+00 : f32
      %c1_96 = arith.constant 1 : index
      %347 = memref.load %arg4[%c1_96] : memref<9xf32, #tpu.memory_space<smem>>
      memref.store %cst_95, %arg4[%c1_96] : memref<9xf32, #tpu.memory_space<smem>>
      %cst_97 = arith.constant 0.000000e+00 : f32
      %c2_98 = arith.constant 2 : index
      %348 = memref.load %arg4[%c2_98] : memref<9xf32, #tpu.memory_space<smem>>
      memref.store %cst_97, %arg4[%c2_98] : memref<9xf32, #tpu.memory_space<smem>>
      %cst_99 = arith.constant 0.000000e+00 : f32
      %c3_100 = arith.constant 3 : index
      %349 = memref.load %arg4[%c3_100] : memref<9xf32, #tpu.memory_space<smem>>
      memref.store %cst_99, %arg4[%c3_100] : memref<9xf32, #tpu.memory_space<smem>>
      %cst_101 = arith.constant 0.000000e+00 : f32
      %c4_102 = arith.constant 4 : index
      %350 = memref.load %arg4[%c4_102] : memref<9xf32, #tpu.memory_space<smem>>
      memref.store %cst_101, %arg4[%c4_102] : memref<9xf32, #tpu.memory_space<smem>>
      %cst_103 = arith.constant 0.000000e+00 : f32
      %c5_104 = arith.constant 5 : index
      %351 = memref.load %arg4[%c5_104] : memref<9xf32, #tpu.memory_space<smem>>
      memref.store %cst_103, %arg4[%c5_104] : memref<9xf32, #tpu.memory_space<smem>>
      %cst_105 = arith.constant 0.000000e+00 : f32
      %c6_106 = arith.constant 6 : index
      %352 = memref.load %arg4[%c6_106] : memref<9xf32, #tpu.memory_space<smem>>
      memref.store %cst_105, %arg4[%c6_106] : memref<9xf32, #tpu.memory_space<smem>>
      %cst_107 = arith.constant 0.000000e+00 : f32
      %c7_108 = arith.constant 7 : index
      %353 = memref.load %arg4[%c7_108] : memref<9xf32, #tpu.memory_space<smem>>
      memref.store %cst_107, %arg4[%c7_108] : memref<9xf32, #tpu.memory_space<smem>>
      %cst_109 = arith.constant 0.000000e+00 : f32
      %c8_110 = arith.constant 8 : index
      %354 = memref.load %arg4[%c8_110] : memref<9xf32, #tpu.memory_space<smem>>
      memref.store %cst_109, %arg4[%c8_110] : memref<9xf32, #tpu.memory_space<smem>>
    } else {
    }
    %c0 = arith.constant 0 : index
    %c0_1 = arith.constant 0 : index
    %3 = vector.load %arg1[%c0, %c0_1] : memref<16x256xbf16, #tpu.memory_space<vmem>>, vector<16x256xbf16>
    %4 = arith.extf %3 : vector<16x256xbf16> to vector<16x256xf32>
    %c0_2 = arith.constant 0 : index
    %c0_3 = arith.constant 0 : index
    %5 = vector.load %arg2[%c0_2, %c0_3] : memref<16x30xi32, #tpu.memory_space<vmem>>, vector<16x30xi32>
    %6 = tpu.iota {dimensions = array<i32: 1>} : vector<16x256xi32>
    %7 = vector.extract_strided_slice %5 {offsets = [0, 0], sizes = [16, 1], strides = [1, 1]} : vector<16x30xi32> to vector<16x1xi32>
    %8 = vector.broadcast %7 : vector<16x1xi32> to vector<16x256xi32>
    %9 = arith.cmpi eq, %8, %6 : vector<16x256xi32>
    %cst = arith.constant 0.000000e+00 : f32
    %10 = vector.broadcast %cst : f32 to vector<16x256xf32>
    %11 = arith.select %9, %4, %10 : vector<16x256xi1>, vector<16x256xf32>
    %cst_4 = arith.constant dense<0.000000e+00> : vector<16xf32>
    %12 = vector.multi_reduction <add>, %11, %cst_4 [1] : vector<16x256xf32> to vector<16xf32>
    %13 = vector.shape_cast %12 : vector<16xf32> to vector<16x1xf32>
    %14 = vector.extract_strided_slice %5 {offsets = [0, 1], sizes = [16, 1], strides = [1, 1]} : vector<16x30xi32> to vector<16x1xi32>
    %15 = vector.broadcast %14 : vector<16x1xi32> to vector<16x256xi32>
    %16 = arith.cmpi eq, %15, %6 : vector<16x256xi32>
    %cst_5 = arith.constant 0.000000e+00 : f32
    %17 = vector.broadcast %cst_5 : f32 to vector<16x256xf32>
    %18 = arith.select %16, %4, %17 : vector<16x256xi1>, vector<16x256xf32>
    %cst_6 = arith.constant dense<0.000000e+00> : vector<16xf32>
    %19 = vector.multi_reduction <add>, %18, %cst_6 [1] : vector<16x256xf32> to vector<16xf32>
    %20 = vector.shape_cast %19 : vector<16xf32> to vector<16x1xf32>
    %21 = vector.extract_strided_slice %5 {offsets = [0, 2], sizes = [16, 1], strides = [1, 1]} : vector<16x30xi32> to vector<16x1xi32>
    %22 = vector.broadcast %21 : vector<16x1xi32> to vector<16x256xi32>
    %23 = arith.cmpi eq, %22, %6 : vector<16x256xi32>
    %cst_7 = arith.constant 0.000000e+00 : f32
    %24 = vector.broadcast %cst_7 : f32 to vector<16x256xf32>
    %25 = arith.select %23, %4, %24 : vector<16x256xi1>, vector<16x256xf32>
    %cst_8 = arith.constant dense<0.000000e+00> : vector<16xf32>
    %26 = vector.multi_reduction <add>, %25, %cst_8 [1] : vector<16x256xf32> to vector<16xf32>
    %27 = vector.shape_cast %26 : vector<16xf32> to vector<16x1xf32>
    %28 = vector.extract_strided_slice %5 {offsets = [0, 3], sizes = [16, 1], strides = [1, 1]} : vector<16x30xi32> to vector<16x1xi32>
    %29 = vector.broadcast %28 : vector<16x1xi32> to vector<16x256xi32>
    %30 = arith.cmpi eq, %29, %6 : vector<16x256xi32>
    %cst_9 = arith.constant 0.000000e+00 : f32
    %31 = vector.broadcast %cst_9 : f32 to vector<16x256xf32>
    %32 = arith.select %30, %4, %31 : vector<16x256xi1>, vector<16x256xf32>
    %cst_10 = arith.constant dense<0.000000e+00> : vector<16xf32>
    %33 = vector.multi_reduction <add>, %32, %cst_10 [1] : vector<16x256xf32> to vector<16xf32>
    %34 = vector.shape_cast %33 : vector<16xf32> to vector<16x1xf32>
    %35 = vector.extract_strided_slice %5 {offsets = [0, 4], sizes = [16, 1], strides = [1, 1]} : vector<16x30xi32> to vector<16x1xi32>
    %36 = vector.broadcast %35 : vector<16x1xi32> to vector<16x256xi32>
    %37 = arith.cmpi eq, %36, %6 : vector<16x256xi32>
    %cst_11 = arith.constant 0.000000e+00 : f32
    %38 = vector.broadcast %cst_11 : f32 to vector<16x256xf32>
    %39 = arith.select %37, %4, %38 : vector<16x256xi1>, vector<16x256xf32>
    %cst_12 = arith.constant dense<0.000000e+00> : vector<16xf32>
    %40 = vector.multi_reduction <add>, %39, %cst_12 [1] : vector<16x256xf32> to vector<16xf32>
    %41 = vector.shape_cast %40 : vector<16xf32> to vector<16x1xf32>
    %42 = vector.extract_strided_slice %5 {offsets = [0, 5], sizes = [16, 1], strides = [1, 1]} : vector<16x30xi32> to vector<16x1xi32>
    %43 = vector.broadcast %42 : vector<16x1xi32> to vector<16x256xi32>
    %44 = arith.cmpi eq, %43, %6 : vector<16x256xi32>
    %cst_13 = arith.constant 0.000000e+00 : f32
    %45 = vector.broadcast %cst_13 : f32 to vector<16x256xf32>
    %46 = arith.select %44, %4, %45 : vector<16x256xi1>, vector<16x256xf32>
    %cst_14 = arith.constant dense<0.000000e+00> : vector<16xf32>
    %47 = vector.multi_reduction <add>, %46, %cst_14 [1] : vector<16x256xf32> to vector<16xf32>
    %48 = vector.shape_cast %47 : vector<16xf32> to vector<16x1xf32>
    %49 = vector.extract_strided_slice %5 {offsets = [0, 6], sizes = [16, 1], strides = [1, 1]} : vector<16x30xi32> to vector<16x1xi32>
    %50 = vector.broadcast %49 : vector<16x1xi32> to vector<16x256xi32>
    %51 = arith.cmpi eq, %50, %6 : vector<16x256xi32>
    %cst_15 = arith.constant 0.000000e+00 : f32
    %52 = vector.broadcast %cst_15 : f32 to vector<16x256xf32>
    %53 = arith.select %51, %4, %52 : vector<16x256xi1>, vector<16x256xf32>
    %cst_16 = arith.constant dense<0.000000e+00> : vector<16xf32>
    %54 = vector.multi_reduction <add>, %53, %cst_16 [1] : vector<16x256xf32> to vector<16xf32>
    %55 = vector.shape_cast %54 : vector<16xf32> to vector<16x1xf32>
    %56 = vector.extract_strided_slice %5 {offsets = [0, 7], sizes = [16, 1], strides = [1, 1]} : vector<16x30xi32> to vector<16x1xi32>
    %57 = vector.broadcast %56 : vector<16x1xi32> to vector<16x256xi32>
    %58 = arith.cmpi eq, %57, %6 : vector<16x256xi32>
    %cst_17 = arith.constant 0.000000e+00 : f32
    %59 = vector.broadcast %cst_17 : f32 to vector<16x256xf32>
    %60 = arith.select %58, %4, %59 : vector<16x256xi1>, vector<16x256xf32>
    %cst_18 = arith.constant dense<0.000000e+00> : vector<16xf32>
    %61 = vector.multi_reduction <add>, %60, %cst_18 [1] : vector<16x256xf32> to vector<16xf32>
    %62 = vector.shape_cast %61 : vector<16xf32> to vector<16x1xf32>
    %63 = vector.extract_strided_slice %5 {offsets = [0, 8], sizes = [16, 1], strides = [1, 1]} : vector<16x30xi32> to vector<16x1xi32>
    %64 = vector.broadcast %63 : vector<16x1xi32> to vector<16x256xi32>
    %65 = arith.cmpi eq, %64, %6 : vector<16x256xi32>
    %cst_19 = arith.constant 0.000000e+00 : f32
    %66 = vector.broadcast %cst_19 : f32 to vector<16x256xf32>
    %67 = arith.select %65, %4, %66 : vector<16x256xi1>, vector<16x256xf32>
    %cst_20 = arith.constant dense<0.000000e+00> : vector<16xf32>
    %68 = vector.multi_reduction <add>, %67, %cst_20 [1] : vector<16x256xf32> to vector<16xf32>
    %69 = vector.shape_cast %68 : vector<16xf32> to vector<16x1xf32>
    %70 = vector.extract_strided_slice %5 {offsets = [0, 9], sizes = [16, 1], strides = [1, 1]} : vector<16x30xi32> to vector<16x1xi32>
    %71 = vector.broadcast %70 : vector<16x1xi32> to vector<16x256xi32>
    %72 = arith.cmpi eq, %71, %6 : vector<16x256xi32>
    %cst_21 = arith.constant 0.000000e+00 : f32
    %73 = vector.broadcast %cst_21 : f32 to vector<16x256xf32>
    %74 = arith.select %72, %4, %73 : vector<16x256xi1>, vector<16x256xf32>
    %cst_22 = arith.constant dense<0.000000e+00> : vector<16xf32>
    %75 = vector.multi_reduction <add>, %74, %cst_22 [1] : vector<16x256xf32> to vector<16xf32>
    %76 = vector.shape_cast %75 : vector<16xf32> to vector<16x1xf32>
    %77 = vector.extract_strided_slice %5 {offsets = [0, 10], sizes = [16, 1], strides = [1, 1]} : vector<16x30xi32> to vector<16x1xi32>
    %78 = vector.broadcast %77 : vector<16x1xi32> to vector<16x256xi32>
    %79 = arith.cmpi eq, %78, %6 : vector<16x256xi32>
    %cst_23 = arith.constant 0.000000e+00 : f32
    %80 = vector.broadcast %cst_23 : f32 to vector<16x256xf32>
    %81 = arith.select %79, %4, %80 : vector<16x256xi1>, vector<16x256xf32>
    %cst_24 = arith.constant dense<0.000000e+00> : vector<16xf32>
    %82 = vector.multi_reduction <add>, %81, %cst_24 [1] : vector<16x256xf32> to vector<16xf32>
    %83 = vector.shape_cast %82 : vector<16xf32> to vector<16x1xf32>
    %84 = vector.extract_strided_slice %5 {offsets = [0, 11], sizes = [16, 1], strides = [1, 1]} : vector<16x30xi32> to vector<16x1xi32>
    %85 = vector.broadcast %84 : vector<16x1xi32> to vector<16x256xi32>
    %86 = arith.cmpi eq, %85, %6 : vector<16x256xi32>
    %cst_25 = arith.constant 0.000000e+00 : f32
    %87 = vector.broadcast %cst_25 : f32 to vector<16x256xf32>
    %88 = arith.select %86, %4, %87 : vector<16x256xi1>, vector<16x256xf32>
    %cst_26 = arith.constant dense<0.000000e+00> : vector<16xf32>
    %89 = vector.multi_reduction <add>, %88, %cst_26 [1] : vector<16x256xf32> to vector<16xf32>
    %90 = vector.shape_cast %89 : vector<16xf32> to vector<16x1xf32>
    %91 = vector.extract_strided_slice %5 {offsets = [0, 12], sizes = [16, 1], strides = [1, 1]} : vector<16x30xi32> to vector<16x1xi32>
    %92 = vector.broadcast %91 : vector<16x1xi32> to vector<16x256xi32>
    %93 = arith.cmpi eq, %92, %6 : vector<16x256xi32>
    %cst_27 = arith.constant 0.000000e+00 : f32
    %94 = vector.broadcast %cst_27 : f32 to vector<16x256xf32>
    %95 = arith.select %93, %4, %94 : vector<16x256xi1>, vector<16x256xf32>
    %cst_28 = arith.constant dense<0.000000e+00> : vector<16xf32>
    %96 = vector.multi_reduction <add>, %95, %cst_28 [1] : vector<16x256xf32> to vector<16xf32>
    %97 = vector.shape_cast %96 : vector<16xf32> to vector<16x1xf32>
    %98 = vector.extract_strided_slice %5 {offsets = [0, 13], sizes = [16, 1], strides = [1, 1]} : vector<16x30xi32> to vector<16x1xi32>
    %99 = vector.broadcast %98 : vector<16x1xi32> to vector<16x256xi32>
    %100 = arith.cmpi eq, %99, %6 : vector<16x256xi32>
    %cst_29 = arith.constant 0.000000e+00 : f32
    %101 = vector.broadcast %cst_29 : f32 to vector<16x256xf32>
    %102 = arith.select %100, %4, %101 : vector<16x256xi1>, vector<16x256xf32>
    %cst_30 = arith.constant dense<0.000000e+00> : vector<16xf32>
    %103 = vector.multi_reduction <add>, %102, %cst_30 [1] : vector<16x256xf32> to vector<16xf32>
    %104 = vector.shape_cast %103 : vector<16xf32> to vector<16x1xf32>
    %105 = vector.extract_strided_slice %5 {offsets = [0, 14], sizes = [16, 1], strides = [1, 1]} : vector<16x30xi32> to vector<16x1xi32>
    %106 = vector.broadcast %105 : vector<16x1xi32> to vector<16x256xi32>
    %107 = arith.cmpi eq, %106, %6 : vector<16x256xi32>
    %cst_31 = arith.constant 0.000000e+00 : f32
    %108 = vector.broadcast %cst_31 : f32 to vector<16x256xf32>
    %109 = arith.select %107, %4, %108 : vector<16x256xi1>, vector<16x256xf32>
    %cst_32 = arith.constant dense<0.000000e+00> : vector<16xf32>
    %110 = vector.multi_reduction <add>, %109, %cst_32 [1] : vector<16x256xf32> to vector<16xf32>
    %111 = vector.shape_cast %110 : vector<16xf32> to vector<16x1xf32>
    %112 = vector.extract_strided_slice %5 {offsets = [0, 15], sizes = [16, 1], strides = [1, 1]} : vector<16x30xi32> to vector<16x1xi32>
    %113 = vector.broadcast %112 : vector<16x1xi32> to vector<16x256xi32>
    %114 = arith.cmpi eq, %113, %6 : vector<16x256xi32>
    %cst_33 = arith.constant 0.000000e+00 : f32
    %115 = vector.broadcast %cst_33 : f32 to vector<16x256xf32>
    %116 = arith.select %114, %4, %115 : vector<16x256xi1>, vector<16x256xf32>
    %cst_34 = arith.constant dense<0.000000e+00> : vector<16xf32>
    %117 = vector.multi_reduction <add>, %116, %cst_34 [1] : vector<16x256xf32> to vector<16xf32>
    %118 = vector.shape_cast %117 : vector<16xf32> to vector<16x1xf32>
    %119 = vector.extract_strided_slice %5 {offsets = [0, 16], sizes = [16, 1], strides = [1, 1]} : vector<16x30xi32> to vector<16x1xi32>
    %120 = vector.broadcast %119 : vector<16x1xi32> to vector<16x256xi32>
    %121 = arith.cmpi eq, %120, %6 : vector<16x256xi32>
    %cst_35 = arith.constant 0.000000e+00 : f32
    %122 = vector.broadcast %cst_35 : f32 to vector<16x256xf32>
    %123 = arith.select %121, %4, %122 : vector<16x256xi1>, vector<16x256xf32>
    %cst_36 = arith.constant dense<0.000000e+00> : vector<16xf32>
    %124 = vector.multi_reduction <add>, %123, %cst_36 [1] : vector<16x256xf32> to vector<16xf32>
    %125 = vector.shape_cast %124 : vector<16xf32> to vector<16x1xf32>
    %126 = vector.extract_strided_slice %5 {offsets = [0, 17], sizes = [16, 1], strides = [1, 1]} : vector<16x30xi32> to vector<16x1xi32>
    %127 = vector.broadcast %126 : vector<16x1xi32> to vector<16x256xi32>
    %128 = arith.cmpi eq, %127, %6 : vector<16x256xi32>
    %cst_37 = arith.constant 0.000000e+00 : f32
    %129 = vector.broadcast %cst_37 : f32 to vector<16x256xf32>
    %130 = arith.select %128, %4, %129 : vector<16x256xi1>, vector<16x256xf32>
    %cst_38 = arith.constant dense<0.000000e+00> : vector<16xf32>
    %131 = vector.multi_reduction <add>, %130, %cst_38 [1] : vector<16x256xf32> to vector<16xf32>
    %132 = vector.shape_cast %131 : vector<16xf32> to vector<16x1xf32>
    %133 = vector.extract_strided_slice %5 {offsets = [0, 18], sizes = [16, 1], strides = [1, 1]} : vector<16x30xi32> to vector<16x1xi32>
    %134 = vector.broadcast %133 : vector<16x1xi32> to vector<16x256xi32>
    %135 = arith.cmpi eq, %134, %6 : vector<16x256xi32>
    %cst_39 = arith.constant 0.000000e+00 : f32
    %136 = vector.broadcast %cst_39 : f32 to vector<16x256xf32>
    %137 = arith.select %135, %4, %136 : vector<16x256xi1>, vector<16x256xf32>
    %cst_40 = arith.constant dense<0.000000e+00> : vector<16xf32>
    %138 = vector.multi_reduction <add>, %137, %cst_40 [1] : vector<16x256xf32> to vector<16xf32>
    %139 = vector.shape_cast %138 : vector<16xf32> to vector<16x1xf32>
    %140 = vector.extract_strided_slice %5 {offsets = [0, 19], sizes = [16, 1], strides = [1, 1]} : vector<16x30xi32> to vector<16x1xi32>
    %141 = vector.broadcast %140 : vector<16x1xi32> to vector<16x256xi32>
    %142 = arith.cmpi eq, %141, %6 : vector<16x256xi32>
    %cst_41 = arith.constant 0.000000e+00 : f32
    %143 = vector.broadcast %cst_41 : f32 to vector<16x256xf32>
    %144 = arith.select %142, %4, %143 : vector<16x256xi1>, vector<16x256xf32>
    %cst_42 = arith.constant dense<0.000000e+00> : vector<16xf32>
    %145 = vector.multi_reduction <add>, %144, %cst_42 [1] : vector<16x256xf32> to vector<16xf32>
    %146 = vector.shape_cast %145 : vector<16xf32> to vector<16x1xf32>
    %147 = vector.extract_strided_slice %5 {offsets = [0, 20], sizes = [16, 1], strides = [1, 1]} : vector<16x30xi32> to vector<16x1xi32>
    %148 = vector.broadcast %147 : vector<16x1xi32> to vector<16x256xi32>
    %149 = arith.cmpi eq, %148, %6 : vector<16x256xi32>
    %cst_43 = arith.constant 0.000000e+00 : f32
    %150 = vector.broadcast %cst_43 : f32 to vector<16x256xf32>
    %151 = arith.select %149, %4, %150 : vector<16x256xi1>, vector<16x256xf32>
    %cst_44 = arith.constant dense<0.000000e+00> : vector<16xf32>
    %152 = vector.multi_reduction <add>, %151, %cst_44 [1] : vector<16x256xf32> to vector<16xf32>
    %153 = vector.shape_cast %152 : vector<16xf32> to vector<16x1xf32>
    %154 = vector.extract_strided_slice %5 {offsets = [0, 21], sizes = [16, 1], strides = [1, 1]} : vector<16x30xi32> to vector<16x1xi32>
    %155 = vector.broadcast %154 : vector<16x1xi32> to vector<16x256xi32>
    %156 = arith.cmpi eq, %155, %6 : vector<16x256xi32>
    %cst_45 = arith.constant 0.000000e+00 : f32
    %157 = vector.broadcast %cst_45 : f32 to vector<16x256xf32>
    %158 = arith.select %156, %4, %157 : vector<16x256xi1>, vector<16x256xf32>
    %cst_46 = arith.constant dense<0.000000e+00> : vector<16xf32>
    %159 = vector.multi_reduction <add>, %158, %cst_46 [1] : vector<16x256xf32> to vector<16xf32>
    %160 = vector.shape_cast %159 : vector<16xf32> to vector<16x1xf32>
    %161 = vector.extract_strided_slice %5 {offsets = [0, 22], sizes = [16, 1], strides = [1, 1]} : vector<16x30xi32> to vector<16x1xi32>
    %162 = vector.broadcast %161 : vector<16x1xi32> to vector<16x256xi32>
    %163 = arith.cmpi eq, %162, %6 : vector<16x256xi32>
    %cst_47 = arith.constant 0.000000e+00 : f32
    %164 = vector.broadcast %cst_47 : f32 to vector<16x256xf32>
    %165 = arith.select %163, %4, %164 : vector<16x256xi1>, vector<16x256xf32>
    %cst_48 = arith.constant dense<0.000000e+00> : vector<16xf32>
    %166 = vector.multi_reduction <add>, %165, %cst_48 [1] : vector<16x256xf32> to vector<16xf32>
    %167 = vector.shape_cast %166 : vector<16xf32> to vector<16x1xf32>
    %168 = vector.extract_strided_slice %5 {offsets = [0, 23], sizes = [16, 1], strides = [1, 1]} : vector<16x30xi32> to vector<16x1xi32>
    %169 = vector.broadcast %168 : vector<16x1xi32> to vector<16x256xi32>
    %170 = arith.cmpi eq, %169, %6 : vector<16x256xi32>
    %cst_49 = arith.constant 0.000000e+00 : f32
    %171 = vector.broadcast %cst_49 : f32 to vector<16x256xf32>
    %172 = arith.select %170, %4, %171 : vector<16x256xi1>, vector<16x256xf32>
    %cst_50 = arith.constant dense<0.000000e+00> : vector<16xf32>
    %173 = vector.multi_reduction <add>, %172, %cst_50 [1] : vector<16x256xf32> to vector<16xf32>
    %174 = vector.shape_cast %173 : vector<16xf32> to vector<16x1xf32>
    %175 = vector.extract_strided_slice %5 {offsets = [0, 24], sizes = [16, 1], strides = [1, 1]} : vector<16x30xi32> to vector<16x1xi32>
    %176 = vector.broadcast %175 : vector<16x1xi32> to vector<16x256xi32>
    %177 = arith.cmpi eq, %176, %6 : vector<16x256xi32>
    %cst_51 = arith.constant 0.000000e+00 : f32
    %178 = vector.broadcast %cst_51 : f32 to vector<16x256xf32>
    %179 = arith.select %177, %4, %178 : vector<16x256xi1>, vector<16x256xf32>
    %cst_52 = arith.constant dense<0.000000e+00> : vector<16xf32>
    %180 = vector.multi_reduction <add>, %179, %cst_52 [1] : vector<16x256xf32> to vector<16xf32>
    %181 = vector.shape_cast %180 : vector<16xf32> to vector<16x1xf32>
    %182 = vector.extract_strided_slice %5 {offsets = [0, 25], sizes = [16, 1], strides = [1, 1]} : vector<16x30xi32> to vector<16x1xi32>
    %183 = vector.broadcast %182 : vector<16x1xi32> to vector<16x256xi32>
    %184 = arith.cmpi eq, %183, %6 : vector<16x256xi32>
    %cst_53 = arith.constant 0.000000e+00 : f32
    %185 = vector.broadcast %cst_53 : f32 to vector<16x256xf32>
    %186 = arith.select %184, %4, %185 : vector<16x256xi1>, vector<16x256xf32>
    %cst_54 = arith.constant dense<0.000000e+00> : vector<16xf32>
    %187 = vector.multi_reduction <add>, %186, %cst_54 [1] : vector<16x256xf32> to vector<16xf32>
    %188 = vector.shape_cast %187 : vector<16xf32> to vector<16x1xf32>
    %189 = vector.extract_strided_slice %5 {offsets = [0, 26], sizes = [16, 1], strides = [1, 1]} : vector<16x30xi32> to vector<16x1xi32>
    %190 = vector.broadcast %189 : vector<16x1xi32> to vector<16x256xi32>
    %191 = arith.cmpi eq, %190, %6 : vector<16x256xi32>
    %cst_55 = arith.constant 0.000000e+00 : f32
    %192 = vector.broadcast %cst_55 : f32 to vector<16x256xf32>
    %193 = arith.select %191, %4, %192 : vector<16x256xi1>, vector<16x256xf32>
    %cst_56 = arith.constant dense<0.000000e+00> : vector<16xf32>
    %194 = vector.multi_reduction <add>, %193, %cst_56 [1] : vector<16x256xf32> to vector<16xf32>
    %195 = vector.shape_cast %194 : vector<16xf32> to vector<16x1xf32>
    %196 = vector.extract_strided_slice %5 {offsets = [0, 27], sizes = [16, 1], strides = [1, 1]} : vector<16x30xi32> to vector<16x1xi32>
    %197 = vector.broadcast %196 : vector<16x1xi32> to vector<16x256xi32>
    %198 = arith.cmpi eq, %197, %6 : vector<16x256xi32>
    %cst_57 = arith.constant 0.000000e+00 : f32
    %199 = vector.broadcast %cst_57 : f32 to vector<16x256xf32>
    %200 = arith.select %198, %4, %199 : vector<16x256xi1>, vector<16x256xf32>
    %cst_58 = arith.constant dense<0.000000e+00> : vector<16xf32>
    %201 = vector.multi_reduction <add>, %200, %cst_58 [1] : vector<16x256xf32> to vector<16xf32>
    %202 = vector.shape_cast %201 : vector<16xf32> to vector<16x1xf32>
    %203 = vector.extract_strided_slice %5 {offsets = [0, 28], sizes = [16, 1], strides = [1, 1]} : vector<16x30xi32> to vector<16x1xi32>
    %204 = vector.broadcast %203 : vector<16x1xi32> to vector<16x256xi32>
    %205 = arith.cmpi eq, %204, %6 : vector<16x256xi32>
    %cst_59 = arith.constant 0.000000e+00 : f32
    %206 = vector.broadcast %cst_59 : f32 to vector<16x256xf32>
    %207 = arith.select %205, %4, %206 : vector<16x256xi1>, vector<16x256xf32>
    %cst_60 = arith.constant dense<0.000000e+00> : vector<16xf32>
    %208 = vector.multi_reduction <add>, %207, %cst_60 [1] : vector<16x256xf32> to vector<16xf32>
    %209 = vector.shape_cast %208 : vector<16xf32> to vector<16x1xf32>
    %210 = vector.extract_strided_slice %5 {offsets = [0, 29], sizes = [16, 1], strides = [1, 1]} : vector<16x30xi32> to vector<16x1xi32>
    %211 = vector.broadcast %210 : vector<16x1xi32> to vector<16x256xi32>
    %212 = arith.cmpi eq, %211, %6 : vector<16x256xi32>
    %cst_61 = arith.constant 0.000000e+00 : f32
    %213 = vector.broadcast %cst_61 : f32 to vector<16x256xf32>
    %214 = arith.select %212, %4, %213 : vector<16x256xi1>, vector<16x256xf32>
    %cst_62 = arith.constant dense<0.000000e+00> : vector<16xf32>
    %215 = vector.multi_reduction <add>, %214, %cst_62 [1] : vector<16x256xf32> to vector<16xf32>
    %216 = vector.shape_cast %215 : vector<16xf32> to vector<16x1xf32>
    %217 = tpu.concatenate %13, %20, %27, %34, %41, %48, %55, %62, %69, %76, %83, %90, %97, %104, %111, %118 in 1 : vector<16x1xf32>, vector<16x1xf32>, vector<16x1xf32>, vector<16x1xf32>, vector<16x1xf32>, vector<16x1xf32>, vector<16x1xf32>, vector<16x1xf32>, vector<16x1xf32>, vector<16x1xf32>, vector<16x1xf32>, vector<16x1xf32>, vector<16x1xf32>, vector<16x1xf32>, vector<16x1xf32>, vector<16x1xf32> -> vector<16x16xf32>
    %218 = tpu.concatenate %125, %132, %139, %146, %153, %160, %167, %174, %181, %188, %195, %202, %209, %216 in 1 : vector<16x1xf32>, vector<16x1xf32>, vector<16x1xf32>, vector<16x1xf32>, vector<16x1xf32>, vector<16x1xf32>, vector<16x1xf32>, vector<16x1xf32>, vector<16x1xf32>, vector<16x1xf32>, vector<16x1xf32>, vector<16x1xf32>, vector<16x1xf32>, vector<16x1xf32> -> vector<16x14xf32>
    %219 = tpu.concatenate %217, %218 in 1 : vector<16x16xf32>, vector<16x14xf32> -> vector<16x30xf32>
    %220 = vector.extract_strided_slice %219 {offsets = [0, 0], sizes = [16, 1], strides = [1, 1]} : vector<16x30xf32> to vector<16x1xf32>
    %cst_63 = arith.constant dense<0xFF800000> : vector<16xf32>
    %221 = vector.multi_reduction <maximumf>, %219, %cst_63 [1] : vector<16x30xf32> to vector<16xf32>
    %222 = vector.shape_cast %221 : vector<16xf32> to vector<16x1xf32>
    %223 = vector.broadcast %222 : vector<16x1xf32> to vector<16x30xf32>
    %224 = arith.subf %219, %223 : vector<16x30xf32>
    %225 = math.exp %224 : vector<16x30xf32>
    %cst_64 = arith.constant dense<0.000000e+00> : vector<16xf32>
    %226 = vector.multi_reduction <add>, %225, %cst_64 [1] : vector<16x30xf32> to vector<16xf32>
    %227 = vector.shape_cast %226 : vector<16xf32> to vector<16x1xf32>
    %228 = math.log %227 : vector<16x1xf32>
    %229 = arith.addf %222, %228 : vector<16x1xf32>
    %230 = arith.subf %229, %220 : vector<16x1xf32>
    %231 = vector.broadcast %220 : vector<16x1xf32> to vector<16x30xf32>
    %232 = arith.cmpf ogt, %219, %231 : vector<16x30xf32>
    %233 = arith.extui %232 : vector<16x30xi1> to vector<16x30xi32>
    %234 = arith.sitofp %233 : vector<16x30xi32> to vector<16x30xf32>
    %cst_65 = arith.constant dense<0.000000e+00> : vector<16xf32>
    %235 = vector.multi_reduction <add>, %234, %cst_65 [1] : vector<16x30xf32> to vector<16xf32>
    %236 = vector.shape_cast %235 : vector<16xf32> to vector<16x1xf32>
    %237 = tpu.iota {dimensions = array<i32: 0>} : vector<16x1xi32>
    %c16_i32 = arith.constant 16 : i32
    %238 = arith.muli %arg0, %c16_i32 : i32
    %239 = vector.broadcast %238 : i32 to vector<16x1xi32>
    %240 = arith.addi %237, %239 : vector<16x1xi32>
    %c24_i32 = arith.constant 24 : i32
    %241 = vector.broadcast %c24_i32 : i32 to vector<16x1xi32>
    %242 = arith.cmpi slt, %240, %241 : vector<16x1xi32>
    %243 = arith.extui %242 : vector<16x1xi1> to vector<16x1xi32>
    %244 = arith.sitofp %243 : vector<16x1xi32> to vector<16x1xf32>
    %cst_66 = arith.constant 2.000000e+00 : f32
    %245 = vector.broadcast %cst_66 : f32 to vector<16x1xf32>
    %246 = arith.addf %236, %245 : vector<16x1xf32>
    %247 = math.log %246 : vector<16x1xf32>
    %248 = tpu.reciprocal %247 {approx = true} : vector<16x1xf32> -> vector<16x1xf32>
    %cst_67 = arith.constant 0.693147182 : f32
    %249 = vector.broadcast %cst_67 : f32 to vector<16x1xf32>
    %250 = arith.mulf %248, %249 : vector<16x1xf32>
    %cst_68 = arith.constant 1.000000e+00 : f32
    %251 = vector.broadcast %cst_68 : f32 to vector<16x1xf32>
    %252 = arith.addf %236, %251 : vector<16x1xf32>
    %253 = tpu.reciprocal %252 {approx = true} : vector<16x1xf32> -> vector<16x1xf32>
    %cst_69 = arith.constant 1.000000e+00 : f32
    %254 = vector.broadcast %cst_69 : f32 to vector<16x1xf32>
    %255 = arith.cmpf olt, %236, %254 : vector<16x1xf32>
    %256 = arith.extui %255 : vector<16x1xi1> to vector<16x1xi32>
    %257 = arith.sitofp %256 : vector<16x1xi32> to vector<16x1xf32>
    %258 = arith.mulf %257, %244 : vector<16x1xf32>
    %cst_70 = arith.constant 3.000000e+00 : f32
    %259 = vector.broadcast %cst_70 : f32 to vector<16x1xf32>
    %260 = arith.cmpf olt, %236, %259 : vector<16x1xf32>
    %261 = arith.extui %260 : vector<16x1xi1> to vector<16x1xi32>
    %262 = arith.sitofp %261 : vector<16x1xi32> to vector<16x1xf32>
    %263 = arith.mulf %262, %244 : vector<16x1xf32>
    %cst_71 = arith.constant 5.000000e+00 : f32
    %264 = vector.broadcast %cst_71 : f32 to vector<16x1xf32>
    %265 = arith.cmpf olt, %236, %264 : vector<16x1xf32>
    %266 = arith.extui %265 : vector<16x1xi1> to vector<16x1xi32>
    %267 = arith.sitofp %266 : vector<16x1xi32> to vector<16x1xf32>
    %268 = arith.mulf %267, %244 : vector<16x1xf32>
    %cst_72 = arith.constant 1.000000e+01 : f32
    %269 = vector.broadcast %cst_72 : f32 to vector<16x1xf32>
    %270 = arith.cmpf olt, %236, %269 : vector<16x1xf32>
    %271 = arith.extui %270 : vector<16x1xi1> to vector<16x1xi32>
    %272 = arith.sitofp %271 : vector<16x1xi32> to vector<16x1xf32>
    %273 = arith.mulf %272, %244 : vector<16x1xf32>
    %c0_73 = arith.constant 0 : index
    %274 = memref.load %arg4[%c0_73] : memref<9xf32, #tpu.memory_space<smem>>
    %275 = vector.shape_cast %258 : vector<16x1xf32> to vector<1x16x1xf32>
    %cst_74 = arith.constant dense<0.000000e+00> : vector<1xf32>
    %276 = vector.multi_reduction <add>, %275, %cst_74 [1, 2] : vector<1x16x1xf32> to vector<1xf32>
    %277 = vector.shape_cast %276 : vector<1xf32> to vector<1x1x1xf32>
    %278 = vector.extract %277[0, 0, 0] : f32 from vector<1x1x1xf32>
    %279 = arith.addf %274, %278 : f32
    %c0_75 = arith.constant 0 : index
    %280 = memref.load %arg4[%c0_75] : memref<9xf32, #tpu.memory_space<smem>>
    memref.store %279, %arg4[%c0_75] : memref<9xf32, #tpu.memory_space<smem>>
    %c1 = arith.constant 1 : index
    %281 = memref.load %arg4[%c1] : memref<9xf32, #tpu.memory_space<smem>>
    %282 = arith.mulf %258, %250 : vector<16x1xf32>
    %283 = vector.shape_cast %282 : vector<16x1xf32> to vector<1x16x1xf32>
    %cst_76 = arith.constant dense<0.000000e+00> : vector<1xf32>
    %284 = vector.multi_reduction <add>, %283, %cst_76 [1, 2] : vector<1x16x1xf32> to vector<1xf32>
    %285 = vector.shape_cast %284 : vector<1xf32> to vector<1x1x1xf32>
    %286 = vector.extract %285[0, 0, 0] : f32 from vector<1x1x1xf32>
    %287 = arith.addf %281, %286 : f32
    %c1_77 = arith.constant 1 : index
    %288 = memref.load %arg4[%c1_77] : memref<9xf32, #tpu.memory_space<smem>>
    memref.store %287, %arg4[%c1_77] : memref<9xf32, #tpu.memory_space<smem>>
    %c2 = arith.constant 2 : index
    %289 = memref.load %arg4[%c2] : memref<9xf32, #tpu.memory_space<smem>>
    %290 = vector.shape_cast %268 : vector<16x1xf32> to vector<1x16x1xf32>
    %cst_78 = arith.constant dense<0.000000e+00> : vector<1xf32>
    %291 = vector.multi_reduction <add>, %290, %cst_78 [1, 2] : vector<1x16x1xf32> to vector<1xf32>
    %292 = vector.shape_cast %291 : vector<1xf32> to vector<1x1x1xf32>
    %293 = vector.extract %292[0, 0, 0] : f32 from vector<1x1x1xf32>
    %294 = arith.addf %289, %293 : f32
    %c2_79 = arith.constant 2 : index
    %295 = memref.load %arg4[%c2_79] : memref<9xf32, #tpu.memory_space<smem>>
    memref.store %294, %arg4[%c2_79] : memref<9xf32, #tpu.memory_space<smem>>
    %c3 = arith.constant 3 : index
    %296 = memref.load %arg4[%c3] : memref<9xf32, #tpu.memory_space<smem>>
    %297 = arith.mulf %268, %250 : vector<16x1xf32>
    %298 = vector.shape_cast %297 : vector<16x1xf32> to vector<1x16x1xf32>
    %cst_80 = arith.constant dense<0.000000e+00> : vector<1xf32>
    %299 = vector.multi_reduction <add>, %298, %cst_80 [1, 2] : vector<1x16x1xf32> to vector<1xf32>
    %300 = vector.shape_cast %299 : vector<1xf32> to vector<1x1x1xf32>
    %301 = vector.extract %300[0, 0, 0] : f32 from vector<1x1x1xf32>
    %302 = arith.addf %296, %301 : f32
    %c3_81 = arith.constant 3 : index
    %303 = memref.load %arg4[%c3_81] : memref<9xf32, #tpu.memory_space<smem>>
    memref.store %302, %arg4[%c3_81] : memref<9xf32, #tpu.memory_space<smem>>
    %c4 = arith.constant 4 : index
    %304 = memref.load %arg4[%c4] : memref<9xf32, #tpu.memory_space<smem>>
    %305 = vector.shape_cast %273 : vector<16x1xf32> to vector<1x16x1xf32>
    %cst_82 = arith.constant dense<0.000000e+00> : vector<1xf32>
    %306 = vector.multi_reduction <add>, %305, %cst_82 [1, 2] : vector<1x16x1xf32> to vector<1xf32>
    %307 = vector.shape_cast %306 : vector<1xf32> to vector<1x1x1xf32>
    %308 = vector.extract %307[0, 0, 0] : f32 from vector<1x1x1xf32>
    %309 = arith.addf %304, %308 : f32
    %c4_83 = arith.constant 4 : index
    %310 = memref.load %arg4[%c4_83] : memref<9xf32, #tpu.memory_space<smem>>
    memref.store %309, %arg4[%c4_83] : memref<9xf32, #tpu.memory_space<smem>>
    %c5 = arith.constant 5 : index
    %311 = memref.load %arg4[%c5] : memref<9xf32, #tpu.memory_space<smem>>
    %312 = arith.mulf %273, %250 : vector<16x1xf32>
    %313 = vector.shape_cast %312 : vector<16x1xf32> to vector<1x16x1xf32>
    %cst_84 = arith.constant dense<0.000000e+00> : vector<1xf32>
    %314 = vector.multi_reduction <add>, %313, %cst_84 [1, 2] : vector<1x16x1xf32> to vector<1xf32>
    %315 = vector.shape_cast %314 : vector<1xf32> to vector<1x1x1xf32>
    %316 = vector.extract %315[0, 0, 0] : f32 from vector<1x1x1xf32>
    %317 = arith.addf %311, %316 : f32
    %c5_85 = arith.constant 5 : index
    %318 = memref.load %arg4[%c5_85] : memref<9xf32, #tpu.memory_space<smem>>
    memref.store %317, %arg4[%c5_85] : memref<9xf32, #tpu.memory_space<smem>>
    %c6 = arith.constant 6 : index
    %319 = memref.load %arg4[%c6] : memref<9xf32, #tpu.memory_space<smem>>
    %320 = arith.mulf %263, %253 : vector<16x1xf32>
    %321 = vector.shape_cast %320 : vector<16x1xf32> to vector<1x16x1xf32>
    %cst_86 = arith.constant dense<0.000000e+00> : vector<1xf32>
    %322 = vector.multi_reduction <add>, %321, %cst_86 [1, 2] : vector<1x16x1xf32> to vector<1xf32>
    %323 = vector.shape_cast %322 : vector<1xf32> to vector<1x1x1xf32>
    %324 = vector.extract %323[0, 0, 0] : f32 from vector<1x1x1xf32>
    %325 = arith.addf %319, %324 : f32
    %c6_87 = arith.constant 6 : index
    %326 = memref.load %arg4[%c6_87] : memref<9xf32, #tpu.memory_space<smem>>
    memref.store %325, %arg4[%c6_87] : memref<9xf32, #tpu.memory_space<smem>>
    %c7 = arith.constant 7 : index
    %327 = memref.load %arg4[%c7] : memref<9xf32, #tpu.memory_space<smem>>
    %328 = arith.mulf %273, %253 : vector<16x1xf32>
    %329 = vector.shape_cast %328 : vector<16x1xf32> to vector<1x16x1xf32>
    %cst_88 = arith.constant dense<0.000000e+00> : vector<1xf32>
    %330 = vector.multi_reduction <add>, %329, %cst_88 [1, 2] : vector<1x16x1xf32> to vector<1xf32>
    %331 = vector.shape_cast %330 : vector<1xf32> to vector<1x1x1xf32>
    %332 = vector.extract %331[0, 0, 0] : f32 from vector<1x1x1xf32>
    %333 = arith.addf %327, %332 : f32
    %c7_89 = arith.constant 7 : index
    %334 = memref.load %arg4[%c7_89] : memref<9xf32, #tpu.memory_space<smem>>
    memref.store %333, %arg4[%c7_89] : memref<9xf32, #tpu.memory_space<smem>>
    %c8 = arith.constant 8 : index
    %335 = memref.load %arg4[%c8] : memref<9xf32, #tpu.memory_space<smem>>
    %336 = arith.mulf %230, %244 : vector<16x1xf32>
    %337 = vector.shape_cast %336 : vector<16x1xf32> to vector<1x16x1xf32>
    %cst_90 = arith.constant dense<0.000000e+00> : vector<1xf32>
    %338 = vector.multi_reduction <add>, %337, %cst_90 [1, 2] : vector<1x16x1xf32> to vector<1xf32>
    %339 = vector.shape_cast %338 : vector<1xf32> to vector<1x1x1xf32>
    %340 = vector.extract %339[0, 0, 0] : f32 from vector<1x1x1xf32>
    %341 = arith.addf %335, %340 : f32
    %c8_91 = arith.constant 8 : index
    %342 = memref.load %arg4[%c8_91] : memref<9xf32, #tpu.memory_space<smem>>
    memref.store %341, %arg4[%c8_91] : memref<9xf32, #tpu.memory_space<smem>>
    %c1_i32 = arith.constant 1 : i32
    %343 = arith.cmpi eq, %arg0, %c1_i32 : i32
    %344 = arith.extui %343 : i1 to i32
    %c0_i32_92 = arith.constant 0 : i32
    %345 = arith.cmpi ne, %344, %c0_i32_92 : i32
    scf.if %345 {
      %c0_93 = arith.constant 0 : index
      %346 = memref.load %arg4[%c0_93] : memref<9xf32, #tpu.memory_space<smem>>
      %cst_94 = arith.constant 0.0416666679 : f32
      %347 = arith.mulf %346, %cst_94 : f32
      %c0_95 = arith.constant 0 : index
      %348 = memref.load %arg3[%c0_95] : memref<9xf32, #tpu.memory_space<smem>>
      memref.store %347, %arg3[%c0_95] : memref<9xf32, #tpu.memory_space<smem>>
      %c1_96 = arith.constant 1 : index
      %349 = memref.load %arg4[%c1_96] : memref<9xf32, #tpu.memory_space<smem>>
      %cst_97 = arith.constant 0.0416666679 : f32
      %350 = arith.mulf %349, %cst_97 : f32
      %c1_98 = arith.constant 1 : index
      %351 = memref.load %arg3[%c1_98] : memref<9xf32, #tpu.memory_space<smem>>
      memref.store %350, %arg3[%c1_98] : memref<9xf32, #tpu.memory_space<smem>>
      %c2_99 = arith.constant 2 : index
      %352 = memref.load %arg4[%c2_99] : memref<9xf32, #tpu.memory_space<smem>>
      %cst_100 = arith.constant 0.0416666679 : f32
      %353 = arith.mulf %352, %cst_100 : f32
      %c2_101 = arith.constant 2 : index
      %354 = memref.load %arg3[%c2_101] : memref<9xf32, #tpu.memory_space<smem>>
      memref.store %353, %arg3[%c2_101] : memref<9xf32, #tpu.memory_space<smem>>
      %c3_102 = arith.constant 3 : index
      %355 = memref.load %arg4[%c3_102] : memref<9xf32, #tpu.memory_space<smem>>
      %cst_103 = arith.constant 0.0416666679 : f32
      %356 = arith.mulf %355, %cst_103 : f32
      %c3_104 = arith.constant 3 : index
      %357 = memref.load %arg3[%c3_104] : memref<9xf32, #tpu.memory_space<smem>>
      memref.store %356, %arg3[%c3_104] : memref<9xf32, #tpu.memory_space<smem>>
      %c4_105 = arith.constant 4 : index
      %358 = memref.load %arg4[%c4_105] : memref<9xf32, #tpu.memory_space<smem>>
      %cst_106 = arith.constant 0.0416666679 : f32
      %359 = arith.mulf %358, %cst_106 : f32
      %c4_107 = arith.constant 4 : index
      %360 = memref.load %arg3[%c4_107] : memref<9xf32, #tpu.memory_space<smem>>
      memref.store %359, %arg3[%c4_107] : memref<9xf32, #tpu.memory_space<smem>>
      %c5_108 = arith.constant 5 : index
      %361 = memref.load %arg4[%c5_108] : memref<9xf32, #tpu.memory_space<smem>>
      %cst_109 = arith.constant 0.0416666679 : f32
      %362 = arith.mulf %361, %cst_109 : f32
      %c5_110 = arith.constant 5 : index
      %363 = memref.load %arg3[%c5_110] : memref<9xf32, #tpu.memory_space<smem>>
      memref.store %362, %arg3[%c5_110] : memref<9xf32, #tpu.memory_space<smem>>
      %c6_111 = arith.constant 6 : index
      %364 = memref.load %arg4[%c6_111] : memref<9xf32, #tpu.memory_space<smem>>
      %cst_112 = arith.constant 0.0416666679 : f32
      %365 = arith.mulf %364, %cst_112 : f32
      %c6_113 = arith.constant 6 : index
      %366 = memref.load %arg3[%c6_113] : memref<9xf32, #tpu.memory_space<smem>>
      memref.store %365, %arg3[%c6_113] : memref<9xf32, #tpu.memory_space<smem>>
      %c7_114 = arith.constant 7 : index
      %367 = memref.load %arg4[%c7_114] : memref<9xf32, #tpu.memory_space<smem>>
      %cst_115 = arith.constant 0.0416666679 : f32
      %368 = arith.mulf %367, %cst_115 : f32
      %c7_116 = arith.constant 7 : index
      %369 = memref.load %arg3[%c7_116] : memref<9xf32, #tpu.memory_space<smem>>
      memref.store %368, %arg3[%c7_116] : memref<9xf32, #tpu.memory_space<smem>>
      %c8_117 = arith.constant 8 : index
      %370 = memref.load %arg4[%c8_117] : memref<9xf32, #tpu.memory_space<smem>>
      %cst_118 = arith.constant 0.0416666679 : f32
      %371 = arith.mulf %370, %cst_118 : f32
      %c8_119 = arith.constant 8 : index
      %372 = memref.load %arg3[%c8_119] : memref<9xf32, #tpu.memory_space<smem>>
      memref.store %371, %arg3[%c8_119] : memref<9xf32, #tpu.memory_space<smem>>
    } else {
    }
    return
  }
  func.func @transform_0(%arg0: i32) -> (i32, i32) {
    %c0_i32 = arith.constant 0 : i32
    %c0_i32_0 = arith.constant 0 : i32
    return %arg0, %c0_i32 : i32, i32
  }
  func.func @transform_1(%arg0: i32) -> (i32, i32) {
    %c0_i32 = arith.constant 0 : i32
    %c0_i32_0 = arith.constant 0 : i32
    return %arg0, %c0_i32 : i32, i32
  }
  func.func @transform_2(%arg0: i32) -> i32 {
    %c0_i32 = arith.constant 0 : i32
    %c0_i32_0 = arith.constant 0 : i32
    return %c0_i32 : i32
  }
}

</mosaic_0001>

<bundles_post_ra>
// kernel: tpu_custom_call.1
= control target key start
LH: loop header
LB: loop body
LE: loop exit
PB: predicated region body
PF: predicated region fallthrough
CT: control target
= control target key end

     0   :  { %7 = vsyncpa [#allocation4], 0  ;;  %s2374_s0 = inlined_call_operand.hbm [shape: bf16[32,256], index: 0, kind: input, shape index: {}]   ;;  %s2375_s1 = inlined_call_operand.hbm [shape: s32[32,30], index: 1, kind: input, shape index: {}]   ;;  %s2376_s2 = inlined_call_operand.hbm [shape: f32[9], index: 2, kind: output, shape index: {}]  }
   0x1   :  { %9 = vsyncpa [#allocation4 + $0x1], 0 }
   0x2   :  { %10 = vsyncpa [#allocation7], 0 }
   0x3   :  { %12 = vsyncpa [#allocation7 + $0x1], 0 }
   0x4   :  { %13 = vsyncpa [#allocation5], 0  ;;  %s1719_s9 = smov 0   ;;  %s1721_s10 = smov 0  }
   0x5   :  { %s1723_s11 = smov 0   ;;  %s1725_s12 = smov 0  }
   0x6 LB: > { %s1738_s13 = sadd.s32 4294967295, %s1666_s12   ;;  %s1741_s14 = sadd.s32 1, %s1666_s12   ;;  %s1666_s12 = sphi %s1725_s12, %s2395_s12   ;;  %s1662_s11 = sphi %s1723_s11, %s2394_s11   ;;  %s1658_s10 = sphi %s1721_s10, %s2393_s10   ;;  %s1654_s9 = sphi %s1719_s9, %s2392_s9  }
   0x7   : > { %s23_s15 = ssub.s32 %s1666_s12, %s1741_s14  ;;  %s26_s16 = sadd.s32 1, %s1662_s11 }
   0x8   : > { %p24_p0 = scmp.eq.s32.totalorder %s23_s15, 0  ;;  %p33_p1 = scmp.ne.s32.totalorder %s1662_s11, %s1658_s10 }
   0x9   : > { %p34_p2 = scmp.eq.s32.totalorder %s1666_s12, 0  ;;  %p39_p3 = scmp.ne.s32.totalorder %s1658_s10, %s1654_s9 }
   0xa   : > { %s1751_s17 = scalar_select %p24_p0, %s1662_s11, %s26_s16  }
   0xb   : > { %p1753_p4 = por %p34_p2, %p33_p1  ;;  %p40_p5 = scmp.eq.s32.totalorder %s1738_s13, 0 }
   0xc   : > { %p1401_p6 = scmp.lt.s32.totalorder %s1666_s12, 2  ;;  %s1766_s20 = sand.u32 1, %s1662_s11  }
   0xd   : > { %p1761_p7 = por %p40_p5, %p39_p3  ;;  %s1300_s21 = sshll.u32 %s1766_s20, 4 }
   0xe   : > { %s1346_s22 = sshll.u32 %s1666_s12, 4  ;;  %s114_s26 = scalar_lea.vmem [#allocation3], %s1300_s21 }
   0xf   : > { %s120_s25 = scalar_lea.hbm %s2374_s0, %s1346_s22  ;;  %s123_s27 = sshll.u32 %s114_s26, 4  ;;  %s124_s27 = int_to_ptr.vmem [resolvable:$true] %s123_s27 }
  0x10   : > { %s121_s28 = sshll.u32 %s120_s25, 4  ;;  %p1779_p8 = pnand %p1401_p6, %p1753_p4  ;;  %s122_s28 = int_to_ptr.hbm [resolvable:$true] %s121_s28 }
  0x11   : > { %p1307_p9 = scmp.ge.s32.totalorder %s1666_s12, 1  ;;  %s111_s30 = scalar_lea.sflag [#allocation4], %s1766_s20 }
  0x12   : > { %s1550_s3 = sshra.s32 %s122_s28, 4  ;;  %p1554_p11 = pneg %p1779_p8  ;;  %s1551_s3 = int_to_ptr.hbm [resolvable:$true] %s1550_s3 }
  0x13   : > { %s1552_s4 = scalar_lea.hbm %s1551_s3, 16  ;;  %s1557_s7 = scalar_lea.hbm %s2374_s0, 32 }
  0x14   : > { %p1553_p10 = scmp.ne.s32.totalorder %s1551_s3, %s1552_s4  ;;  %p1558_p0 = scmp.lt.s32.totalorder %s1551_s3, %s2374_s0 }
  0x15   : > { %p1559_p1 = scmp.lt.s32.totalorder %s1557_s7, %s1552_s4 }
  0x16   : > { %p1555_p12 = pnand %p1554_p11, %p1553_p10 }
  0x17   : > { %p1560_p2 = por %p1559_p1, %p1558_p0 }
  0x18   : > { %p1556_p13 = pneg %p1555_p12 }
  0x1a   : > { %p1561_p3 = pnand %p1560_p2, %p1556_p13 }
  0x1c   : > { %1564 = shalt.err (!%p1561_p3)
}
  0x1d   : > { %s1668_s15 = smov 128   ;;  %s1669_s16 = smov 8  }
  0x1e   : > { %1397 = dma.hbm_to_vmem [thread:$0]  (!%p1779_p8), %s122_s28, 256, %s124_s27, %s111_s30, %s1668_s15, %s1668_s15, %s1669_s16  }
  0x1f   : > { %p153_p4 = scmp.lt.s32.totalorder %s1666_s12, 3  ;;  %s142_s24 = scalar_lea.hbm %s2375_s1, %s1346_s22 }
  0x20   : > { %s143_s26 = sshll.u32 %s142_s24, 4  ;;  %s137_s3 = scalar_lea.vmem [#allocation6], %s1300_s21  ;;  %s144_s26 = int_to_ptr.hbm [resolvable:$true] %s143_s26 }
  0x21   : > { %p1806_p6 = pnand %p1307_p9, %p153_p4  ;;  %s145_s4 = sshll.u32 %s137_s3, 4  ;;  %s146_s4 = int_to_ptr.vmem [resolvable:$true] %s145_s4 }
  0x22   : > { %s134_s5 = scalar_lea.sflag [#allocation7], %s1766_s20  ;;  %s1580_s6 = sshra.s32 %s144_s26, 4  ;;  %s1581_s6 = int_to_ptr.hbm [resolvable:$true] %s1580_s6 }
  0x23   : > { %s1582_s27 = scalar_lea.hbm %s1581_s6, 16  ;;  %s1587_s28 = scalar_lea.hbm %s2375_s1, 32 }
  0x24   : > { %p1583_p10 = scmp.ne.s32.totalorder %s1581_s6, %s1582_s27  ;;  %p1588_p9 = scmp.lt.s32.totalorder %s1581_s6, %s2375_s1 }
  0x25   : > { %p1589_p0 = scmp.lt.s32.totalorder %s1587_s28, %s1582_s27 }
  0x26   : > { %p1585_p12 = pnand %p1583_p10, %p1554_p11 }
  0x27   : > { %p1590_p1 = por %p1589_p0, %p1588_p9 }
  0x28   : > { %p1586_p13 = pneg %p1585_p12 }
  0x2a   : > { %p1591_p2 = pnand %p1590_p1, %p1586_p13 }
  0x2c   : > { %1594 = shalt.err (!%p1591_p2)
}
  0x2d   : > { %1400 = dma.hbm_to_vmem [thread:$0]  (!%p1779_p8), %s144_s26, 256, %s146_s4, %s134_s5, %s1668_s15, %s1668_s15, %s1669_s16  }
  0x2e   : > { %157 = sbr.rel (%p1806_p6) target bundleno = 3051 (0xbeb), region = 28  ;;  %s159_s20 = sand.u32 (!%p1806_p6), 1, %s1658_s10  }
  0x2f   : > { %s1308_s21 = sshll.u32 (!%p1806_p6), %s159_s20, 4  ;;  %s160_s8 = scalar_lea.sflag (!%p1806_p6), [#allocation4], %s159_s20 }
  0x30   : > { %s1827_s9 = scalar_lea.vmem (!%p1806_p6), [#allocation3], %s1308_s21 }
  0x33   : > { %1641 = dma.done.wait (%p1761_p7), %s160_s8, 256  }
  0x34   : > { %1643 = vsyncadd (%p1761_p7), %s160_s8, 4294967040  ;;  %s170_s18 = scalar_lea.sflag [#allocation7], %s159_s20  ;;  %s1833_s23 = scalar_lea.vmem [#allocation6], %s1308_s21 }
  0x35   : > { %1645 = dma.done.wait (%p1761_p7), %s170_s18, 256  }
  0x36   : > { %1647 = vsyncadd (%p1761_p7), %s170_s18, 4294967040  ;;  %v1670_v0 = vmov 0   ;;  %v1671_v1 = vmov 1   ;;  %v1672_v2 = vmov 2   ;;  %v1841_v3 = vld [vmem:[%s1833_s23] sm:$0xff]  ;;  %v1846_v4 = vld [vmem:[%s1833_s23 + $0x8] sm:$0xff]  ;;  %v227_v7 = vlaneseq }
  0x37   : > { %1474 = vset.pattern.permute.xlu0 %v1670_v0  ;;  %1475 = vset.pattern.permute.xlu2 %v1671_v1  ;;  %v1673_v5 = vmov 4   ;;  %v1674_v6 = vmov 3   ;;  %v219_v9 = vld [vmem:[%s1827_s9] sm:$0xff]  ;;  %v220_v26 = vld [vmem:[%s1827_s9 + $0x8] sm:$0xff]  ;;  %v1675_v33 = vmov 5   ;;  %v1676_v44 = vmov 6  }
  0x38   : > { %1477 = vset.pattern.permute.xlu1 %v1672_v2  ;;  %231 = vperm.xlu0 %1474, %v1841_v3   ;;  %v1857_v8 = vand.u32 127, %v227_v7  ;;  %v1863_v11 = vunpack.c.l.bf16 %v219_v9  ;;  %v1865_v12 = vunpack.c.h.bf16 %v219_v9  ;;  %v1880_v28 = vunpack.c.l.bf16 %v220_v26  ;;  %s1700_s19 = smov 16   ;;  %s1313_s29 = sshll.u32 %s1738_s13, 4 }
  0x39   : > { %251 = vperm.xlu2 %1475, %v1841_v3   ;;  %274 = vperm.xlu1 %1477, %v1846_v4   ;;  %v1882_v29 = vunpack.c.h.bf16 %v220_v26  ;;  %v1677_v9 = vmov 7   ;;  %s1702_s15 = smov 0.0  }
  0x3a   : > { %v1861_v10 = vadd.s32 128, %v1857_v8  ;;  %1371 = sst [smem:[#allocation2]] (%p40_p5), %s1702_s15 }
  0x3b   : > { %1372 = sst [smem:[#allocation2 + $0x1]] (%p40_p5), %s1702_s15 }
  0x3c   : > { %1373 = sst [smem:[#allocation2 + $0x2]] (%p40_p5), %s1702_s15 }
  0x3d   : > { %1374 = sst [smem:[#allocation2 + $0x3]] (%p40_p5), %s1702_s15 }
  0x3e   : > { %1375 = sst [smem:[#allocation2 + $0x4]] (%p40_p5), %s1702_s15 }
  0x3f   : > { %1376 = sst [smem:[#allocation2 + $0x5]] (%p40_p5), %s1702_s15 }
  0x40   : > { %234 = vperm.xlu0 %1474, %v1846_v4   ;;  %1377 = sst [smem:[#allocation2 + $0x6]] (%p40_p5), %s1702_s15 }
  0x41   : > { %254 = vperm.xlu2 %1475, %v1846_v4   ;;  %1481 = vset.pattern.permute.xlu1 %v1673_v5  ;;  %1378 = sst [smem:[#allocation2 + $0x7]] (%p40_p5), %s1702_s15 }
  0x42   : > { %314 = vperm.xlu1 %1481, %v1846_v4   ;;  %1379 = sst [smem:[#allocation2 + $0x8]] (%p40_p5), %s1702_s15  ;;  %p1403_p5 = scmp.eq.s32.totalorder %s1738_s13, 1 }
  0x43   : > { %s1020_s16 = sld [smem:[#allocation2]] }
  0x44   : > { %s1324_s3 = sld [smem:[#allocation2 + $0x1]] }
  0x45   : > { %s1325_s4 = sld [smem:[#allocation2 + $0x2]] }
  0x46   : > { %s1326_s5 = sld [smem:[#allocation2 + $0x3]] }
  0x47   : > { %s1327_s27 = sld [smem:[#allocation2 + $0x4]] }
  0x48   : > { %1478 = vset.pattern.permute.xlu0 %v1674_v6  ;;  %s1328_s20 = sld [smem:[#allocation2 + $0x5]] }
  0x49   : > { %1476 = vset.pattern.permute.xlu2 %v1672_v2  ;;  %291 = vperm.xlu0 %1478, %v1841_v3   ;;  %s1329_s8 = sld [smem:[#allocation2 + $0x6]] }
  0x4a   : > { %271 = vperm.xlu2 %1476, %v1841_v3   ;;  %1484 = vset.pattern.permute.xlu1 %v1676_v44  ;;  %s1330_s15 = sld [smem:[#allocation2 + $0x7]] }
  0x51   : > { %1480 = vset.pattern.permute.xlu0 %v1673_v5 }
  0x52   : > { %1479 = vset.pattern.permute.xlu2 %v1674_v6  ;;  %311 = vperm.xlu0 %1480, %v1841_v3  }
  0x53   : > { %294 = vperm.xlu2 %1479, %v1846_v4  }
  0x5a   : > { %1483 = vset.pattern.permute.xlu0 %v1676_v44 }
  0x5b   : > { %1482 = vset.pattern.permute.xlu2 %v1675_v33 }
  0x93   : > { %v252_v13 = vpop.permute.xlu2 %251 }
  0x94   : > { %vm256_vm0 = vcmp.eq.s32.totalorder %v252_v13, %v1857_v8  ;;  %vm257_vm1 = vcmp.eq.s32.totalorder %v252_v13, %v1861_v10 }
  0x95   : > { %v260_v14 = vsel %vm256_vm0, %v1863_v11, 0.0  ;;  %v261_v15 = vsel %vm257_vm1, %v1865_v12, 0.0 }
  0x96   : > { %v264_v16 = vadd.f32 %v261_v15, %v260_v14 }
  0x98   : > { %265 = vadd.xlane.f32.xlu0 %v264_v16 }
  0x9b   : > { %v255_v17 = vpop.permute.xlu2 %254 }
  0x9c   : > { %vm258_vm8 = vcmp.eq.s32.totalorder %v255_v17, %v1857_v8  ;;  %vm259_vm9 = vcmp.eq.s32.totalorder %v255_v17, %v1861_v10 }
  0x9d   : > { %v262_v34 = vsel %vm258_vm8, %v1880_v28, 0.0  ;;  %v263_v35 = vsel %vm259_vm9, %v1882_v29, 0.0 }
  0x9e   : > { %v267_v38 = vadd.f32 %v263_v35, %v262_v34 }
  0xa4   : > { %v272_v18 = vpop.permute.xlu2 %271 }
  0xa5   : > { %vm276_vm2 = vcmp.eq.s32.totalorder %v272_v18, %v1857_v8  ;;  %vm277_vm3 = vcmp.eq.s32.totalorder %v272_v18, %v1861_v10 }
  0xa6   : > { %v280_v19 = vsel %vm276_vm2, %v1863_v11, 0.0  ;;  %v281_v20 = vsel %vm277_vm3, %v1865_v12, 0.0 }
  0xa7   : > { %v284_v21 = vadd.f32 %v281_v20, %v280_v19 }
  0xa9   : > { %285 = vadd.xlane.f32.xlu2 %v284_v21 }
  0xaa   : > { %v232_v22 = vpop.permute.xlu0 %231 }
  0xab   : > { %vm236_vm4 = vcmp.eq.s32.totalorder %v232_v22, %v1857_v8  ;;  %vm237_vm5 = vcmp.eq.s32.totalorder %v232_v22, %v1861_v10  ;;  %v275_v36 = vpop.permute.xlu1 %274 }
  0xac   : > { %v240_v23 = vsel %vm236_vm4, %v1863_v11, 0.0  ;;  %v241_v24 = vsel %vm237_vm5, %v1865_v12, 0.0  ;;  %vm278_vm12 = vcmp.eq.s32.totalorder %v275_v36, %v1857_v8  ;;  %vm279_vm13 = vcmp.eq.s32.totalorder %v275_v36, %v1861_v10 }
  0xad   : > { %v244_v25 = vadd.f32 %v241_v24, %v240_v23  ;;  %v282_v42 = vsel %vm278_vm12, %v1880_v28, 0.0  ;;  %v283_v43 = vsel %vm279_vm13, %v1882_v29, 0.0  ;;  %v295_v45 = vpop.permute.xlu2 %294  ;;  %vm830_vm4 = vcmask 7168  }
  0xae   : > { %v287_v46 = vadd.f32 %v283_v43, %v282_v42  ;;  %vm298_vm0 = vcmp.eq.s32.totalorder %v295_v45, %v1857_v8  ;;  %vm299_vm1 = vcmp.eq.s32.totalorder %v295_v45, %v1861_v10  ;;  %vm833_vm5 = vcmask 15360  }
  0xaf   : > { %245 = vadd.xlane.f32.xlu1 %v244_v25  ;;  %v302_v51 = vsel %vm298_vm0, %v1880_v28, 0.0  ;;  %v303_v52 = vsel %vm299_vm1, %v1882_v29, 0.0 }
  0xb0   : > { %v307_v54 = vadd.f32 %v303_v52, %v302_v51 }
  0xb2   : > { %v235_v27 = vpop.permute.xlu0 %234 }
  0xb3   : > { %vm238_vm6 = vcmp.eq.s32.totalorder %v235_v27, %v1857_v8  ;;  %vm239_vm7 = vcmp.eq.s32.totalorder %v235_v27, %v1861_v10  ;;  %v1678_v27 = vmov 8  }
  0xb4   : > { %v242_v30 = vsel %vm238_vm6, %v1880_v28, 0.0  ;;  %v243_v31 = vsel %vm239_vm7, %v1882_v29, 0.0  ;;  %v315_v53 = vpop.permute.xlu1 %314  ;;  %vm836_vm6 = vcmask 23552  }
  0xb5   : > { %v247_v32 = vadd.f32 %v243_v31, %v242_v30  ;;  %vm318_vm2 = vcmp.eq.s32.totalorder %v315_v53, %v1857_v8  ;;  %vm319_vm3 = vcmp.eq.s32.totalorder %v315_v53, %v1861_v10 }
  0xb6   : > { %v322_v55 = vsel %vm318_vm2, %v1880_v28, 0.0  ;;  %v323_v56 = vsel %vm319_vm3, %v1882_v29, 0.0  ;;  %vm845_vm3 = vcmask 48128  }
  0xb7   : > { %248 = vadd.xlane.f32.xlu1 %v247_v32  ;;  %v327_v57 = vadd.f32 %v323_v56, %v322_v55 }
  0xbb   : > { %v292_v37 = vpop.permute.xlu0 %291 }
  0xbc   : > { %vm296_vm10 = vcmp.eq.s32.totalorder %v292_v37, %v1857_v8  ;;  %vm297_vm11 = vcmp.eq.s32.totalorder %v292_v37, %v1861_v10 }
  0xbd   : > { %v300_v39 = vsel %vm296_vm10, %v1863_v11, 0.0  ;;  %v301_v40 = vsel %vm297_vm11, %v1865_v12, 0.0  ;;  %vm839_vm11 = vcmask 31744  }
  0xbe   : > { %v304_v41 = vadd.f32 %v301_v40, %v300_v39 }
  0xbf   : > { %268 = vadd.xlane.f32.xlu1 %v267_v38 }
  0xc0   : > { %305 = vadd.xlane.f32.xlu2 %v304_v41 }
  0xc4   : > { %v312_v47 = vpop.permute.xlu0 %311 }
  0xc5   : > { %vm316_vm14 = vcmp.eq.s32.totalorder %v312_v47, %v1857_v8  ;;  %vm317_vm15 = vcmp.eq.s32.totalorder %v312_v47, %v1861_v10 }
  0xc6   : > { %v320_v48 = vsel %vm316_vm14, %v1863_v11, 0.0  ;;  %v321_v49 = vsel %vm317_vm15, %v1865_v12, 0.0  ;;  %vm842_vm14 = vcmask 39936  }
  0xc7   : > { %288 = vadd.xlane.f32.xlu1 %v287_v46  ;;  %v324_v50 = vadd.f32 %v321_v49, %v320_v48 }
  0xc9   : > { %325 = vadd.xlane.f32.xlu0 %v324_v50  ;;  %v1679_v50 = vmov 9  }
  0xcf   : > { %308 = vadd.xlane.f32.xlu1 %v307_v54 }
  0xd7   : > { %328 = vadd.xlane.f32.xlu1 %v327_v57 }
  0xd8   : > { %331 = vperm.xlu2 %1482, %v1841_v3  }
  0xe0   : > { %334 = vperm.xlu2 %1482, %v1846_v4  }
  0xe8   : > { %1486 = vset.pattern.permute.xlu2 %v1677_v9 }
  0xf0   : > { %354 = vperm.xlu1 %1484, %v1846_v4  }
  0xf8   : > { %1488 = vset.pattern.permute.xlu1 %v1678_v27 }
 0x10b   : > { %v266_v58 = vpop.xlane.xlu0 %265 }
 0x11c   : > { %v286_v59 = vpop.xlane.xlu2 %285 }
 0x122   : > { %v246_v60 = vpop.xlane.xlu1 %245 }
 0x123   : > { %v831_v61 = vsel %vm830_vm4, %v246_v60, %v266_v58 }
 0x124   : > { %v834_v62 = vsel %vm833_vm5, %v831_v61, %v286_v59 }
 0x12a   : > { %v249_v63 = vpop.xlane.xlu1 %248 }
 0x132   : > { %v269_v1 = vpop.xlane.xlu1 %268 }
 0x133   : > { %v832_v2 = vsel %vm830_vm4, %v249_v63, %v269_v1  ;;  %v306_v5 = vpop.xlane.xlu2 %305  ;;  %v1680_v63 = vmov 10  }
 0x134   : > { %v837_v6 = vsel %vm836_vm6, %v834_v62, %v306_v5 }
 0x13a   : > { %v289_v13 = vpop.xlane.xlu1 %288 }
 0x13b   : > { %v835_v14 = vsel %vm833_vm5, %v832_v2, %v289_v13  ;;  %v332_v15 = vpop.permute.xlu2 %331 }
 0x13c   : > { %vm336_vm7 = vcmp.eq.s32.totalorder %v332_v15, %v1857_v8  ;;  %vm337_vm8 = vcmp.eq.s32.totalorder %v332_v15, %v1861_v10  ;;  %v326_v34 = vpop.xlane.xlu0 %325 }
 0x13d   : > { %v340_v16 = vsel %vm336_vm7, %v1863_v11, 0.0  ;;  %v341_v17 = vsel %vm337_vm8, %v1865_v12, 0.0  ;;  %v840_v35 = vsel %vm839_vm11, %v837_v6, %v326_v34 }
 0x13e   : > { %v344_v18 = vadd.f32 %v341_v17, %v340_v16 }
 0x140   : > { %345 = vadd.xlane.f32.xlu0 %v344_v18 }
 0x142   : > { %v309_v19 = vpop.xlane.xlu1 %308 }
 0x143   : > { %v838_v20 = vsel %vm836_vm6, %v835_v14, %v309_v19  ;;  %v335_v21 = vpop.permute.xlu2 %334 }
 0x144   : > { %vm338_vm9 = vcmp.eq.s32.totalorder %v335_v21, %v1857_v8  ;;  %vm339_vm10 = vcmp.eq.s32.totalorder %v335_v21, %v1861_v10 }
 0x145   : > { %v342_v22 = vsel %vm338_vm9, %v1880_v28, 0.0  ;;  %v343_v23 = vsel %vm339_vm10, %v1882_v29, 0.0 }
 0x146   : > { %v347_v24 = vadd.f32 %v343_v23, %v342_v22  ;;  %v1681_v23 = vmov 11  }
 0x148   : > { %348 = vadd.xlane.f32.xlu2 %v347_v24  ;;  %v1682_v24 = vmov 12  }
 0x14a   : > { %v329_v25 = vpop.xlane.xlu1 %328 }
 0x14b   : > { %v841_v26 = vsel %vm839_vm11, %v838_v20, %v329_v25 }
 0x154   : > { %351 = vperm.xlu0 %1483, %v1841_v3  }
 0x15c   : > { %1485 = vset.pattern.permute.xlu0 %v1677_v9 }
 0x15d   : > { %371 = vperm.xlu0 %1485, %v1841_v3  }
 0x162   : > { %v355_v30 = vpop.permute.xlu1 %354 }
 0x163   : > { %vm358_vm12 = vcmp.eq.s32.totalorder %v355_v30, %v1857_v8  ;;  %vm359_vm13 = vcmp.eq.s32.totalorder %v355_v30, %v1861_v10 }
 0x164   : > { %v362_v31 = vsel %vm358_vm12, %v1880_v28, 0.0  ;;  %v363_v32 = vsel %vm359_vm13, %v1882_v29, 0.0  ;;  %vm848_vm12 = vcmask 56320  }
 0x165   : > { %v367_v33 = vadd.f32 %v363_v32, %v362_v31  ;;  %1490 = vset.pattern.permute.xlu0 %v1679_v50 }
 0x167   : > { %368 = vadd.xlane.f32.xlu2 %v367_v33 }
 0x17f   : > { %374 = vperm.xlu2 %1486, %v1846_v4  }
 0x187   : > { %1487 = vset.pattern.permute.xlu2 %v1678_v27 }
 0x188   : > { %391 = vperm.xlu2 %1487, %v1841_v3  }
 0x190   : > { %1491 = vset.pattern.permute.xlu2 %v1680_v63 }
 0x1b3   : > { %v346_v36 = vpop.xlane.xlu0 %345 }
 0x1b4   : > { %v843_v37 = vsel %vm842_vm14, %v840_v35, %v346_v36 }
 0x1bb   : > { %v349_v38 = vpop.xlane.xlu2 %348 }
 0x1bc   : > { %v844_v39 = vsel %vm842_vm14, %v841_v26, %v349_v38  ;;  %v1683_v38 = vmov 13  }
 0x1c6   : > { %v352_v40 = vpop.permute.xlu0 %351 }
 0x1c7   : > { %vm356_vm15 = vcmp.eq.s32.totalorder %v352_v40, %v1857_v8  ;;  %vm357_vm0 = vcmp.eq.s32.totalorder %v352_v40, %v1861_v10 }
 0x1c8   : > { %v360_v41 = vsel %vm356_vm15, %v1863_v11, 0.0  ;;  %v361_v42 = vsel %vm357_vm0, %v1865_v12, 0.0 }
 0x1c9   : > { %v364_v43 = vadd.f32 %v361_v42, %v360_v41 }
 0x1cb   : > { %365 = vadd.xlane.f32.xlu1 %v364_v43 }
 0x1cf   : > { %v372_v44 = vpop.permute.xlu0 %371 }
 0x1d0   : > { %vm376_vm1 = vcmp.eq.s32.totalorder %v372_v44, %v1857_v8  ;;  %vm377_vm2 = vcmp.eq.s32.totalorder %v372_v44, %v1861_v10 }
 0x1d1   : > { %v380_v45 = vsel %vm376_vm1, %v1863_v11, 0.0  ;;  %v381_v46 = vsel %vm377_vm2, %v1865_v12, 0.0  ;;  %vm851_vm2 = vcmask 64512  }
 0x1d2   : > { %v384_v47 = vadd.f32 %v381_v46, %v380_v45 }
 0x1d4   : > { %385 = vadd.xlane.f32.xlu0 %v384_v47 }
 0x1da   : > { %v369_v48 = vpop.xlane.xlu2 %368 }
 0x1db   : > { %v847_v49 = vsel %vm845_vm3, %v844_v39, %v369_v48 }
 0x1e2   : > { %v375_v51 = vpop.permute.xlu2 %374 }
 0x1e3   : > { %vm378_vm7 = vcmp.eq.s32.totalorder %v375_v51, %v1857_v8  ;;  %vm379_vm8 = vcmp.eq.s32.totalorder %v375_v51, %v1861_v10 }
 0x1e4   : > { %v382_v52 = vsel %vm378_vm7, %v1880_v28, 0.0  ;;  %v383_v53 = vsel %vm379_vm8, %v1882_v29, 0.0 }
 0x1e5   : > { %v387_v54 = vadd.f32 %v383_v53, %v382_v52 }
 0x1e7   : > { %388 = vadd.xlane.f32.xlu1 %v387_v54 }
 0x1ea   : > { %v392_v55 = vpop.permute.xlu2 %391 }
 0x1eb   : > { %vm396_vm9 = vcmp.eq.s32.totalorder %v392_v55, %v1857_v8  ;;  %vm397_vm10 = vcmp.eq.s32.totalorder %v392_v55, %v1861_v10 }
 0x1ec   : > { %v400_v56 = vsel %vm396_vm9, %v1863_v11, 0.0  ;;  %v401_v57 = vsel %vm397_vm10, %v1865_v12, 0.0 }
 0x1ed   : > { %v404_v58 = vadd.f32 %v401_v57, %v400_v56 }
 0x1ef   : > { %405 = vadd.xlane.f32.xlu2 %v404_v58 }
 0x200   : > { %394 = vperm.xlu1 %1488, %v1846_v4  }
 0x208   : > { %1489 = vset.pattern.permute.xlu1 %v1679_v50 }
 0x209   : > { %411 = vperm.xlu1 %1489, %v1841_v3  }
 0x211   : > { %1493 = vset.pattern.permute.xlu1 %v1681_v23 }
 0x23e   : > { %v366_v59 = vpop.xlane.xlu1 %365 }
 0x23f   : > { %v1961_v60 = vsel %vm845_vm3, %v843_v37, %v366_v59  ;;  %v1684_v59 = vmov 14  }
 0x247   : > { %v1974_v16 = vpop.xlane.xlu0 %385 }
 0x248   : > { %v849_v51 = vsel %vm848_vm12, %v1961_v60, %v1974_v16 }
 0x25a   : > { %v389_v61 = vpop.xlane.xlu1 %388 }
 0x25b   : > { %v850_v62 = vsel %vm848_vm12, %v847_v49, %v389_v61 }
 0x262   : > { %v406_v31 = vpop.xlane.xlu2 %405 }
 0x263   : > { %v852_v52 = vsel %vm851_vm2, %v849_v51, %v406_v31 }
 0x272   : > { %v395_v1 = vpop.permute.xlu1 %394 }
 0x273   : > { %vm398_vm13 = vcmp.eq.s32.totalorder %v395_v1, %v1857_v8  ;;  %vm399_vm15 = vcmp.eq.s32.totalorder %v395_v1, %v1861_v10 }
 0x274   : > { %v402_v2 = vsel %vm398_vm13, %v1880_v28, 0.0  ;;  %v403_v5 = vsel %vm399_vm15, %v1882_v29, 0.0  ;;  %vm854_vm13 = vcmask 72704  }
 0x275   : > { %v407_v6 = vadd.f32 %v403_v5, %v402_v2 }
 0x277   : > { %408 = vadd.xlane.f32.xlu0 %v407_v6 }
 0x27b   : > { %v412_v9 = vpop.permute.xlu1 %411 }
 0x27c   : > { %vm416_vm0 = vcmp.eq.s32.totalorder %v412_v9, %v1857_v8  ;;  %vm417_vm1 = vcmp.eq.s32.totalorder %v412_v9, %v1861_v10 }
 0x27d   : > { %v420_v13 = vsel %vm416_vm0, %v1863_v11, 0.0  ;;  %v421_v14 = vsel %vm417_vm1, %v1865_v12, 0.0  ;;  %vm857_vm1 = vcmask 80896  }
 0x27e   : > { %v424_v15 = vadd.f32 %v421_v14, %v420_v13 }
 0x280   : > { %425 = vadd.xlane.f32.xlu1 %v424_v15 }
 0x28b   : > { %414 = vperm.xlu0 %1490, %v1846_v4  }
 0x293   : > { %1492 = vset.pattern.permute.xlu0 %v1680_v63 }
 0x294   : > { %434 = vperm.xlu0 %1492, %v1846_v4  }
 0x29c   : > { %1494 = vset.pattern.permute.xlu0 %v1681_v23  ;;  %v1685_v23 = vmov 15  }
 0x29d   : > { %454 = vperm.xlu0 %1494, %v1846_v4  }
 0x2a5   : > { %1497 = vset.pattern.permute.xlu0 %v1683_v38 }
 0x2ea   : > { %v409_v17 = vpop.xlane.xlu0 %408 }
 0x2eb   : > { %v853_v18 = vsel %vm851_vm2, %v850_v62, %v409_v17 }
 0x2f3   : > { %v426_v50 = vpop.xlane.xlu1 %425 }
 0x2f4   : > { %v855_v53 = vsel %vm854_vm13, %v852_v52, %v426_v50 }
 0x2fd   : > { %v415_v19 = vpop.permute.xlu0 %414 }
 0x2fe   : > { %vm418_vm7 = vcmp.eq.s32.totalorder %v415_v19, %v1857_v8  ;;  %vm419_vm8 = vcmp.eq.s32.totalorder %v415_v19, %v1861_v10 }
 0x2ff   : > { %v422_v20 = vsel %vm418_vm7, %v1880_v28, 0.0  ;;  %v423_v21 = vsel %vm419_vm8, %v1882_v29, 0.0 }
 0x300   : > { %v427_v22 = vadd.f32 %v423_v21, %v422_v20 }
 0x302   : > { %428 = vadd.xlane.f32.xlu2 %v427_v22 }
 0x306   : > { %v435_v25 = vpop.permute.xlu0 %434 }
 0x307   : > { %vm438_vm9 = vcmp.eq.s32.totalorder %v435_v25, %v1857_v8  ;;  %vm439_vm10 = vcmp.eq.s32.totalorder %v435_v25, %v1861_v10 }
 0x308   : > { %v442_v26 = vsel %vm438_vm9, %v1880_v28, 0.0  ;;  %v443_v27 = vsel %vm439_vm10, %v1882_v29, 0.0 }
 0x309   : > { %v447_v30 = vadd.f32 %v443_v27, %v442_v26 }
 0x30f   : > { %v455_v41 = vpop.permute.xlu0 %454 }
 0x310   : > { %vm458_vm7 = vcmp.eq.s32.totalorder %v455_v41, %v1857_v8  ;;  %vm459_vm8 = vcmp.eq.s32.totalorder %v455_v41, %v1861_v10 }
 0x311   : > { %v462_v43 = vsel %vm458_vm7, %v1880_v28, 0.0  ;;  %v463_v44 = vsel %vm459_vm8, %v1882_v29, 0.0 }
 0x312   : > { %v467_v45 = vadd.f32 %v463_v44, %v462_v43 }
 0x31a   : > { %431 = vperm.xlu2 %1491, %v1841_v3  }
 0x322   : > { %1495 = vset.pattern.permute.xlu2 %v1682_v24 }
 0x343   : > { %448 = vadd.xlane.f32.xlu2 %v447_v30 }
 0x35b   : > { %471 = vperm.xlu2 %1495, %v1841_v3  }
 0x363   : > { %474 = vperm.xlu2 %1495, %v1846_v4  }
 0x36b   : > { %1499 = vset.pattern.permute.xlu2 %v1684_v59 }
 0x375   : > { %v429_v32 = vpop.xlane.xlu2 %428 }
 0x376   : > { %v856_v33 = vsel %vm854_vm13, %v853_v18, %v429_v32 }
 0x37d   : > { %v432_v34 = vpop.permute.xlu2 %431 }
 0x37e   : > { %vm436_vm15 = vcmp.eq.s32.totalorder %v432_v34, %v1857_v8  ;;  %vm437_vm0 = vcmp.eq.s32.totalorder %v432_v34, %v1861_v10 }
 0x37f   : > { %v440_v35 = vsel %vm436_vm15, %v1863_v11, 0.0  ;;  %v441_v36 = vsel %vm437_vm0, %v1865_v12, 0.0 }
 0x380   : > { %v444_v37 = vadd.f32 %v441_v36, %v440_v35 }
 0x382   : > { %445 = vadd.xlane.f32.xlu1 %v444_v37 }
 0x39b   : > { %451 = vperm.xlu1 %1493, %v1841_v3  }
 0x3a3   : > { %1496 = vset.pattern.permute.xlu1 %v1683_v38 }
 0x3b6   : > { %v449_v39 = vpop.xlane.xlu2 %448 }
 0x3b7   : > { %v859_v40 = vsel %vm857_vm1, %v856_v33, %v449_v39 }
 0x3be   : > { %v472_v42 = vpop.permute.xlu2 %471 }
 0x3bf   : > { %vm476_vm7 = vcmp.eq.s32.totalorder %v472_v42, %v1857_v8  ;;  %vm477_vm8 = vcmp.eq.s32.totalorder %v472_v42, %v1861_v10  ;;  %v1686_v42 = vmov 16  }
 0x3c0   : > { %v480_v61 = vsel %vm476_vm7, %v1863_v11, 0.0  ;;  %v481_v62 = vsel %vm477_vm8, %v1865_v12, 0.0 }
 0x3c1   : > { %v484_v63 = vadd.f32 %v481_v62, %v480_v61 }
 0x3c5   : > { %468 = vadd.xlane.f32.xlu1 %v467_v45  ;;  %v1687_v45 = vmov 17  }
 0x3c6   : > { %v475_v46 = vpop.permute.xlu2 %474 }
 0x3c7   : > { %vm478_vm9 = vcmp.eq.s32.totalorder %v475_v46, %v1857_v8  ;;  %vm479_vm10 = vcmp.eq.s32.totalorder %v475_v46, %v1861_v10 }
 0x3c8   : > { %v482_v47 = vsel %vm478_vm9, %v1880_v28, 0.0  ;;  %v483_v48 = vsel %vm479_vm10, %v1882_v29, 0.0  ;;  %vm860_vm9 = vcmask 89088  }
 0x3c9   : > { %v487_v49 = vadd.f32 %v483_v48, %v482_v47 }
 0x3cb   : > { %488 = vadd.xlane.f32.xlu2 %v487_v49 }
 0x3de   : > { %491 = vperm.xlu1 %1496, %v1841_v3  }
 0x3e6   : > { %1501 = vset.pattern.permute.xlu1 %v1685_v23 }
 0x3f5   : > { %v446_v54 = vpop.xlane.xlu1 %445 }
 0x3f6   : > { %v858_v55 = vsel %vm857_vm1, %v855_v53, %v446_v54 }
 0x40d   : > { %v452_v56 = vpop.permute.xlu1 %451 }
 0x40e   : > { %vm456_vm15 = vcmp.eq.s32.totalorder %v452_v56, %v1857_v8  ;;  %vm457_vm0 = vcmp.eq.s32.totalorder %v452_v56, %v1861_v10 }
 0x40f   : > { %v460_v57 = vsel %vm456_vm15, %v1863_v11, 0.0  ;;  %v461_v58 = vsel %vm457_vm0, %v1865_v12, 0.0  ;;  %vm2377_vm0 = vcmask 97280  }
 0x410   : > { %v464_v60 = vadd.f32 %v461_v58, %v460_v57  ;;  %v1688_v57 = vmov 18   ;;  %v1689_v58 = vmov 19  }
 0x412   : > { %465 = vadd.xlane.f32.xlu0 %v464_v60 }
 0x41a   : > { %485 = vadd.xlane.f32.xlu0 %v484_v63 }
 0x42e   : > { %494 = vperm.xlu0 %1497, %v1846_v4  }
 0x436   : > { %1498 = vset.pattern.permute.xlu0 %v1684_v59 }
 0x437   : > { %511 = vperm.xlu0 %1498, %v1841_v3  }
 0x438   : > { %v469_v1 = vpop.xlane.xlu1 %468 }
 0x439   : > { %v862_v2 = vsel %vm860_vm9, %v859_v40, %v469_v1  ;;  %v1690_v1 = vmov 20  }
 0x43e   : > { %v489_v27 = vpop.xlane.xlu2 %488 }
 0x43f   : > { %v865_v30 = vsel %vm2377_vm0, %v862_v2, %v489_v27  ;;  %1503 = vset.pattern.permute.xlu0 %v1686_v42 }
 0x450   : > { %v492_v5 = vpop.permute.xlu1 %491 }
 0x451   : > { %vm496_vm10 = vcmp.eq.s32.totalorder %v492_v5, %v1857_v8  ;;  %vm497_vm15 = vcmp.eq.s32.totalorder %v492_v5, %v1861_v10 }
 0x452   : > { %v500_v6 = vsel %vm496_vm10, %v1863_v11, 0.0  ;;  %v501_v9 = vsel %vm497_vm15, %v1865_v12, 0.0 }
 0x453   : > { %v504_v13 = vadd.f32 %v501_v9, %v500_v6 }
 0x455   : > { %505 = vadd.xlane.f32.xlu1 %v504_v13 }
 0x485   : > { %v466_v14 = vpop.xlane.xlu0 %465 }
 0x486   : > { %v861_v15 = vsel %vm860_vm9, %v858_v55, %v466_v14 }
 0x48d   : > { %v486_v16 = vpop.xlane.xlu0 %485 }
 0x48e   : > { %v2028_v17 = vsel %vm2377_vm0, %v861_v15, %v486_v16 }
 0x4a0   : > { %v495_v18 = vpop.permute.xlu0 %494 }
 0x4a1   : > { %vm498_vm7 = vcmp.eq.s32.totalorder %v495_v18, %v1857_v8  ;;  %vm499_vm8 = vcmp.eq.s32.totalorder %v495_v18, %v1861_v10 }
 0x4a2   : > { %v502_v19 = vsel %vm498_vm7, %v1880_v28, 0.0  ;;  %v503_v20 = vsel %vm499_vm8, %v1882_v29, 0.0  ;;  %vm2380_vm7 = vcmask 105472  }
 0x4a3   : > { %v507_v21 = vadd.f32 %v503_v20, %v502_v19  ;;  %v1691_v20 = vmov 21  }
 0x4a5   : > { %508 = vadd.xlane.f32.xlu2 %v507_v21 }
 0x4a9   : > { %v512_v22 = vpop.permute.xlu0 %511 }
 0x4aa   : > { %vm516_vm10 = vcmp.eq.s32.totalorder %v512_v22, %v1857_v8  ;;  %vm517_vm15 = vcmp.eq.s32.totalorder %v512_v22, %v1861_v10 }
 0x4ab   : > { %v520_v24 = vsel %vm516_vm10, %v1863_v11, 0.0  ;;  %v521_v25 = vsel %vm517_vm15, %v1865_v12, 0.0 }
 0x4ac   : > { %v524_v26 = vadd.f32 %v521_v25, %v520_v24 }
 0x4ae   : > { %525 = vadd.xlane.f32.xlu0 %v524_v26 }
 0x4bd   : > { %514 = vperm.xlu2 %1499, %v1846_v4  }
 0x4c5   : > { %1500 = vset.pattern.permute.xlu2 %v1685_v23 }
 0x4c6   : > { %531 = vperm.xlu2 %1500, %v1841_v3  }
 0x4c8   : > { %v2051_v41 = vpop.xlane.xlu1 %505 }
 0x4ce   : > { %1504 = vset.pattern.permute.xlu2 %v1687_v45 }
 0x518   : > { %v509_v31 = vpop.xlane.xlu2 %508 }
 0x519   : > { %v868_v32 = vsel %vm2380_vm7, %v865_v30, %v509_v31 }
 0x520   : > { %v515_v33 = vpop.permute.xlu2 %514 }
 0x521   : > { %vm518_vm8 = vcmp.eq.s32.totalorder %v515_v33, %v1857_v8  ;;  %vm519_vm10 = vcmp.eq.s32.totalorder %v515_v33, %v1861_v10  ;;  %v2061_v50 = vpop.xlane.xlu0 %525 }
 0x522   : > { %v522_v34 = vsel %vm518_vm8, %v1880_v28, 0.0  ;;  %v523_v35 = vsel %vm519_vm10, %v1882_v29, 0.0  ;;  %vm2378_vm8 = vcmask 113664  }
 0x523   : > { %v527_v36 = vadd.f32 %v523_v35, %v522_v34 }
 0x525   : > { %528 = vadd.xlane.f32.xlu1 %v527_v36 }
 0x528   : > { %v532_v37 = vpop.permute.xlu2 %531 }
 0x529   : > { %vm536_vm15 = vcmp.eq.s32.totalorder %v532_v37, %v1857_v8  ;;  %vm537_vm0 = vcmp.eq.s32.totalorder %v532_v37, %v1861_v10 }
 0x52a   : > { %v540_v38 = vsel %vm536_vm15, %v1863_v11, 0.0  ;;  %v541_v39 = vsel %vm537_vm0, %v1865_v12, 0.0  ;;  %vm2379_vm15 = vcmask 121856  }
 0x52b   : > { %v544_v40 = vadd.f32 %v541_v39, %v540_v38 }
 0x52d   : > { %545 = vadd.xlane.f32.xlu2 %v544_v40 }
 0x53e   : > { %534 = vperm.xlu1 %1501, %v1846_v4  }
 0x546   : > { %1502 = vset.pattern.permute.xlu1 %v1686_v42 }
 0x547   : > { %551 = vperm.xlu1 %1502, %v1841_v3  }
 0x54f   : > { %1506 = vset.pattern.permute.xlu1 %v1688_v57 }
 0x598   : > { %v529_v43 = vpop.xlane.xlu1 %528 }
 0x599   : > { %v871_v44 = vsel %vm2378_vm8, %v868_v32, %v529_v43 }
 0x5a0   : > { %v2083_v9 = vpop.xlane.xlu2 %545 }
 0x5b0   : > { %v535_v46 = vpop.permute.xlu1 %534 }
 0x5b1   : > { %vm538_vm0 = vcmp.eq.s32.totalorder %v535_v46, %v1857_v8  ;;  %vm539_vm10 = vcmp.eq.s32.totalorder %v535_v46, %v1861_v10 }
 0x5b2   : > { %v542_v47 = vsel %vm538_vm0, %v1880_v28, 0.0  ;;  %v543_v48 = vsel %vm539_vm10, %v1882_v29, 0.0 }
 0x5b3   : > { %v547_v49 = vadd.f32 %v543_v48, %v542_v47 }
 0x5b5   : > { %548 = vadd.xlane.f32.xlu0 %v547_v49 }
 0x5b9   : > { %v552_v63 = vpop.permute.xlu1 %551 }
 0x5c9   : > { %554 = vperm.xlu0 %1503, %v1846_v4  }
 0x5d1   : > { %1505 = vset.pattern.permute.xlu0 %v1687_v45 }
 0x5d2   : > { %574 = vperm.xlu0 %1505, %v1846_v4  }
 0x5da   : > { %1507 = vset.pattern.permute.xlu0 %v1688_v57 }
 0x5db   : > { %594 = vperm.xlu0 %1507, %v1846_v4  }
 0x5e3   : > { %1510 = vset.pattern.permute.xlu0 %v1690_v1 }
 0x628   : > { %v549_v51 = vpop.xlane.xlu0 %548 }
 0x629   : > { %v2064_v52 = vsel %vm2379_vm15, %v871_v44, %v549_v51 }
 0x63b   : > { %v555_v53 = vpop.permute.xlu0 %554 }
 0x63c   : > { %vm558_vm8 = vcmp.eq.s32.totalorder %v555_v53, %v1857_v8  ;;  %vm559_vm0 = vcmp.eq.s32.totalorder %v555_v53, %v1861_v10 }
 0x63d   : > { %v562_v54 = vsel %vm558_vm8, %v1880_v28, 0.0  ;;  %v563_v55 = vsel %vm559_vm0, %v1882_v29, 0.0  ;;  %vm556_vm8 = vcmp.eq.s32.totalorder %v552_v63, %v1857_v8  ;;  %vm557_vm0 = vcmp.eq.s32.totalorder %v552_v63, %v1861_v10 }
 0x63e   : > { %v567_v56 = vadd.f32 %v563_v55, %v562_v54  ;;  %v560_v2 = vsel %vm556_vm8, %v1863_v11, 0.0  ;;  %v561_v5 = vsel %vm557_vm0, %v1865_v12, 0.0 }
 0x63f   : > { %v564_v6 = vadd.f32 %v561_v5, %v560_v2  ;;  %v1693_v2 = vmov 22  }
 0x640   : > { %568 = vadd.xlane.f32.xlu2 %v567_v56 }
 0x641   : > { %565 = vadd.xlane.f32.xlu1 %v564_v6 }
 0x644   : > { %v575_v59 = vpop.permute.xlu0 %574 }
 0x645   : > { %vm578_vm10 = vcmp.eq.s32.totalorder %v575_v59, %v1857_v8  ;;  %vm579_vm15 = vcmp.eq.s32.totalorder %v575_v59, %v1861_v10 }
 0x646   : > { %v582_v60 = vsel %vm578_vm10, %v1880_v28, 0.0  ;;  %v583_v61 = vsel %vm579_vm15, %v1882_v29, 0.0 }
 0x647   : > { %v587_v62 = vadd.f32 %v583_v61, %v582_v60 }
 0x64d   : > { %v595_v22 = vpop.permute.xlu0 %594 }
 0x64e   : > { %vm598_vm8 = vcmp.eq.s32.totalorder %v595_v22, %v1857_v8  ;;  %vm599_vm0 = vcmp.eq.s32.totalorder %v595_v22, %v1861_v10  ;;  %v1696_v22 = vmov 26  }
 0x64f   : > { %v602_v24 = vsel %vm598_vm8, %v1880_v28, 0.0  ;;  %v603_v25 = vsel %vm599_vm0, %v1882_v29, 0.0 }
 0x650   : > { %v607_v26 = vadd.f32 %v603_v25, %v602_v24  ;;  %v1698_v24 = vmov 29  }
 0x658   : > { %571 = vperm.xlu2 %1504, %v1841_v3  }
 0x660   : > { %1508 = vset.pattern.permute.xlu2 %v1689_v58 }
 0x681   : > { %588 = vadd.xlane.f32.xlu2 %v587_v62 }
 0x699   : > { %611 = vperm.xlu2 %1508, %v1841_v3  }
 0x6a1   : > { %614 = vperm.xlu2 %1508, %v1846_v4  }
 0x6a9   : > { %1509 = vset.pattern.permute.xlu2 %v1690_v1  ;;  %v1692_v1 = vmov 23  }
 0x6aa   : > { %631 = vperm.xlu2 %1509, %v1841_v3  }
 0x6b2   : > { %1512 = vset.pattern.permute.xlu2 %v1693_v2 }
 0x6b3   : > { %v569_v13 = vpop.xlane.xlu2 %568 }
 0x6b4   : > { %v566_v37 = vpop.xlane.xlu1 %565 }
 0x6bb   : > { %v572_v14 = vpop.permute.xlu2 %571 }
 0x6bc   : > { %vm576_vm15 = vcmp.eq.s32.totalorder %v572_v14, %v1857_v8  ;;  %vm577_vm10 = vcmp.eq.s32.totalorder %v572_v14, %v1861_v10 }
 0x6bd   : > { %v580_v15 = vsel %vm576_vm15, %v1863_v11, 0.0  ;;  %v581_v16 = vsel %vm577_vm10, %v1865_v12, 0.0 }
 0x6be   : > { %v584_v18 = vadd.f32 %v581_v16, %v580_v15 }
 0x6c0   : > { %585 = vadd.xlane.f32.xlu1 %v584_v18 }
 0x6d9   : > { %591 = vperm.xlu1 %1506, %v1841_v3  }
 0x6e1   : > { %1511 = vset.pattern.permute.xlu1 %v1691_v20  ;;  %v1695_v20 = vmov 25  }
 0x6f4   : > { %v589_v19 = vpop.xlane.xlu2 %588 }
 0x6f5   : > { %v876_v21 = vsel %vm830_vm4, %v569_v13, %v589_v19  ;;  %v1694_v19 = vmov 24  }
 0x6fc   : > { %v612_v23 = vpop.permute.xlu2 %611 }
 0x703   : > { %608 = vadd.xlane.f32.xlu1 %v607_v26 }
 0x704   : > { %v615_v27 = vpop.permute.xlu2 %614 }
 0x705   : > { %vm618_vm15 = vcmp.eq.s32.totalorder %v615_v27, %v1857_v8  ;;  %vm619_vm10 = vcmp.eq.s32.totalorder %v615_v27, %v1861_v10 }
 0x706   : > { %v622_v30 = vsel %vm618_vm15, %v1880_v28, 0.0  ;;  %v623_v31 = vsel %vm619_vm10, %v1882_v29, 0.0  ;;  %vm617_vm10 = vcmp.eq.s32.totalorder %v612_v23, %v1861_v10 }
 0x707   : > { %v627_v32 = vadd.f32 %v623_v31, %v622_v30  ;;  %v621_v46 = vsel %vm617_vm10, %v1865_v12, 0.0 }
 0x70b   : > { %628 = vadd.xlane.f32.xlu1 %v627_v32 }
 0x70c   : > { %v632_v33 = vpop.permute.xlu2 %631 }
 0x70d   : > { %vm636_vm7 = vcmp.eq.s32.totalorder %v632_v33, %v1857_v8  ;;  %vm637_vm8 = vcmp.eq.s32.totalorder %v632_v33, %v1861_v10 }
 0x70e   : > { %v640_v34 = vsel %vm636_vm7, %v1863_v11, 0.0  ;;  %v641_v35 = vsel %vm637_vm8, %v1865_v12, 0.0  ;;  %vm616_vm7 = vcmp.eq.s32.totalorder %v612_v23, %v1857_v8  ;;  %v1697_v23 = vmov 27  }
 0x70f   : > { %v644_v36 = vadd.f32 %v641_v35, %v640_v34  ;;  %v620_v45 = vsel %vm616_vm7, %v1863_v11, 0.0 }
 0x710   : > { %v624_v47 = vadd.f32 %v621_v46, %v620_v45 }
 0x713   : > { %645 = vadd.xlane.f32.xlu1 %v644_v36 }
 0x72c   : > { %651 = vperm.xlu1 %1511, %v1841_v3  }
 0x733   : > { %v586_v38 = vpop.xlane.xlu1 %585 }
 0x734   : > { %v875_v39 = vsel %vm830_vm4, %v566_v37, %v586_v38  ;;  %654 = vperm.xlu1 %1511, %v1846_v4  }
 0x73c   : > { %1513 = vset.pattern.permute.xlu1 %v1692_v1 }
 0x74b   : > { %v592_v40 = vpop.permute.xlu1 %591 }
 0x74c   : > { %vm596_vm0 = vcmp.eq.s32.totalorder %v592_v40, %v1857_v8  ;;  %vm597_vm15 = vcmp.eq.s32.totalorder %v592_v40, %v1861_v10 }
 0x74d   : > { %v600_v42 = vsel %vm596_vm0, %v1863_v11, 0.0  ;;  %v601_v43 = vsel %vm597_vm15, %v1865_v12, 0.0 }
 0x74e   : > { %v604_v44 = vadd.f32 %v601_v43, %v600_v42 }
 0x750   : > { %605 = vadd.xlane.f32.xlu0 %v604_v44  ;;  %v1699_v44 = vmov 28  }
 0x758   : > { %625 = vadd.xlane.f32.xlu0 %v624_v47 }
 0x76c   : > { %634 = vperm.xlu0 %1510, %v1846_v4  }
 0x774   : > { %1514 = vset.pattern.permute.xlu0 %v1692_v1 }
 0x776   : > { %v609_v48 = vpop.xlane.xlu1 %608 }
 0x777   : > { %v878_v49 = vsel %vm833_vm5, %v876_v21, %v609_v48  ;;  %v1549_v21 = vld [vmem:[%s1833_s23 + $0x8] sm:$0xff] }
 0x77e   : > { %v629_v51 = vpop.xlane.xlu1 %628 }
 0x77f   : > { %v2117_v53 = vsel %vm836_vm6, %v878_v49, %v629_v51 }
 0x786   : > { %v646_v54 = vpop.xlane.xlu1 %645 }
 0x79e   : > { %v652_v55 = vpop.permute.xlu1 %651 }
 0x79f   : > { %vm656_vm8 = vcmp.eq.s32.totalorder %v652_v55, %v1857_v8  ;;  %vm657_vm0 = vcmp.eq.s32.totalorder %v652_v55, %v1861_v10 }
 0x7a0   : > { %v660_v56 = vsel %vm656_vm8, %v1863_v11, 0.0  ;;  %v661_v57 = vsel %vm657_vm0, %v1865_v12, 0.0 }
 0x7a1   : > { %v664_v58 = vadd.f32 %v661_v57, %v660_v56 }
 0x7a3   : > { %665 = vadd.xlane.f32.xlu0 %v664_v58 }
 0x7a6   : > { %v655_v4 = vpop.permute.xlu1 %654 }
 0x7a7   : > { %vm658_vm15 = vcmp.eq.s32.totalorder %v655_v4, %v1857_v8  ;;  %vm659_vm7 = vcmp.eq.s32.totalorder %v655_v4, %v1861_v10 }
 0x7a8   : > { %v662_v59 = vsel %vm658_vm15, %v1880_v28, 0.0  ;;  %v663_v60 = vsel %vm659_vm7, %v1882_v29, 0.0 }
 0x7a9   : > { %v667_v61 = vadd.f32 %v663_v60, %v662_v59 }
 0x7ab   : > { %668 = vadd.xlane.f32.xlu1 %v667_v61 }
 0x7c3   : > { %v606_v62 = vpop.xlane.xlu0 %605 }
 0x7c4   : > { %v877_v63 = vsel %vm833_vm5, %v875_v39, %v606_v62  ;;  %691 = vperm.xlu1 %1513, %v1841_v3   ;;  %v1548_v3 = vld [vmem:[%s1833_s23] sm:$0xff] }
 0x7cb   : > { %v626_v5 = vpop.xlane.xlu0 %625 }
 0x7cc   : > { %v879_v6 = vsel %vm836_vm6, %v877_v63, %v626_v5  ;;  %1515 = vset.pattern.permute.xlu1 %v1694_v19 }
 0x7cd   : > { %v2131_v13 = vsel %vm839_vm11, %v879_v6, %v646_v54  ;;  %711 = vperm.xlu1 %1515, %v1548_v3  }
 0x7d5   : > { %1517 = vset.pattern.permute.xlu1 %v1695_v20 }
 0x7d6   : > { %731 = vperm.xlu1 %1517, %v1548_v3  }
 0x7de   : > { %v635_v14 = vpop.permute.xlu0 %634  ;;  %734 = vperm.xlu1 %1517, %v1549_v21  }
 0x7df   : > { %vm638_vm10 = vcmp.eq.s32.totalorder %v635_v14, %v1857_v8  ;;  %vm639_vm5 = vcmp.eq.s32.totalorder %v635_v14, %v1861_v10 }
 0x7e0   : > { %v642_v15 = vsel %vm638_vm10, %v1880_v28, 0.0  ;;  %v643_v16 = vsel %vm639_vm5, %v1882_v29, 0.0 }
 0x7e1   : > { %v647_v18 = vadd.f32 %v643_v16, %v642_v15 }
 0x7e3   : > { %648 = vadd.xlane.f32.xlu2 %v647_v18 }
 0x7e6   : > { %1519 = vset.pattern.permute.xlu1 %v1696_v22 }
 0x7e7   : > { %754 = vperm.xlu1 %1519, %v1549_v21  }
 0x7ef   : > { %1521 = vset.pattern.permute.xlu1 %v1697_v23 }
 0x7f0   : > { %774 = vperm.xlu1 %1521, %v1549_v21  }
 0x7f8   : > { %1524 = vset.pattern.permute.xlu1 %v1698_v24 }
 0x7f9   : > { %811 = vperm.xlu1 %1524, %v1548_v3  }
 0x7fb   : > { %671 = vperm.xlu2 %1512, %v1548_v3  }
 0x803   : > { %674 = vperm.xlu2 %1512, %v1549_v21  }
 0x80b   : > { %1516 = vset.pattern.permute.xlu2 %v1694_v19 }
 0x816   : > { %v666_v54 = vpop.xlane.xlu0 %665 }
 0x817   : > { %v883_v56 = vsel %vm842_vm14, %v2131_v13, %v666_v54 }
 0x81e   : > { %v669_v25 = vpop.xlane.xlu1 %668 }
 0x836   : > { %v692_v26 = vpop.permute.xlu1 %691 }
 0x837   : > { %vm696_vm6 = vcmp.eq.s32.totalorder %v692_v26, %v1857_v8  ;;  %vm697_vm8 = vcmp.eq.s32.totalorder %v692_v26, %v1861_v10 }
 0x838   : > { %v700_v27 = vsel %vm696_vm6, %v1863_v11, 0.0  ;;  %v701_v30 = vsel %vm697_vm8, %v1865_v12, 0.0 }
 0x839   : > { %v704_v31 = vadd.f32 %v701_v30, %v700_v27 }
 0x83b   : > { %705 = vadd.xlane.f32.xlu1 %v704_v31 }
 0x83f   : > { %v712_v45 = vpop.permute.xlu1 %711 }
 0x840   : > { %vm717_vm5 = vcmp.eq.s32.totalorder %v712_v45, %v1861_v10 }
 0x841   : > { %v721_v47 = vsel %vm717_vm5, %v1865_v12, 0.0 }
 0x848   : > { %v732_v49 = vpop.permute.xlu1 %731 }
 0x850   : > { %v735_v51 = vpop.permute.xlu1 %734 }
 0x851   : > { %vm738_vm6 = vcmp.eq.s32.totalorder %v735_v51, %v1857_v8  ;;  %vm739_vm8 = vcmp.eq.s32.totalorder %v735_v51, %v1861_v10 }
 0x856   : > { %v649_v32 = vpop.xlane.xlu2 %648 }
 0x857   : > { %v882_v33 = vsel %vm839_vm11, %v2117_v53, %v649_v32  ;;  %vm716_vm11 = vcmp.eq.s32.totalorder %v712_v45, %v1857_v8  ;;  %v742_v53 = vsel %vm738_vm6, %v1880_v28, 0.0  ;;  %vm736_vm6 = vcmp.eq.s32.totalorder %v732_v49, %v1857_v8 }
 0x858   : > { %v884_v34 = vsel %vm842_vm14, %v882_v33, %v669_v25  ;;  %v720_v46 = vsel %vm716_vm11, %v1863_v11, 0.0 }
 0x859   : > { %v724_v48 = vadd.f32 %v721_v47, %v720_v46  ;;  %v755_v14 = vpop.permute.xlu1 %754 }
 0x85e   : > { %v672_v35 = vpop.permute.xlu2 %671 }
 0x85f   : > { %vm676_vm0 = vcmp.eq.s32.totalorder %v672_v35, %v1857_v8  ;;  %vm677_vm15 = vcmp.eq.s32.totalorder %v672_v35, %v1861_v10 }
 0x860   : > { %v680_v36 = vsel %vm676_vm0, %v1863_v11, 0.0  ;;  %v681_v37 = vsel %vm677_vm15, %v1865_v12, 0.0 }
 0x861   : > { %v684_v38 = vadd.f32 %v681_v37, %v680_v36 }
 0x863   : > { %685 = vadd.xlane.f32.xlu2 %v684_v38 }
 0x866   : > { %v675_v39 = vpop.permute.xlu2 %674 }
 0x867   : > { %vm678_vm7 = vcmp.eq.s32.totalorder %v675_v39, %v1857_v8  ;;  %vm679_vm10 = vcmp.eq.s32.totalorder %v675_v39, %v1861_v10 }
 0x868   : > { %v682_v40 = vsel %vm678_vm7, %v1880_v28, 0.0  ;;  %v683_v42 = vsel %vm679_vm10, %v1882_v29, 0.0 }
 0x869   : > { %v687_v43 = vadd.f32 %v683_v42, %v682_v40 }
 0x86b   : > { %688 = vadd.xlane.f32.xlu0 %v687_v43 }
 0x87b   : > { %714 = vperm.xlu2 %1516, %v1549_v21  }
 0x87f   : > { %694 = vperm.xlu0 %1514, %v1549_v21  }
 0x883   : > { %1520 = vset.pattern.permute.xlu2 %v1697_v23 }
 0x884   : > { %771 = vperm.xlu2 %1520, %v1548_v3  }
 0x887   : > { %1518 = vset.pattern.permute.xlu0 %v1696_v22  ;;  %v740_v22 = vsel %vm736_vm6, %v1863_v11, 0.0 }
 0x888   : > { %751 = vperm.xlu0 %1518, %v1548_v3  }
 0x88c   : > { %1523 = vset.pattern.permute.xlu2 %v1699_v44 }
 0x88d   : > { %794 = vperm.xlu2 %1523, %v1549_v21  }
 0x890   : > { %1522 = vset.pattern.permute.xlu0 %v1699_v44 }
 0x891   : > { %791 = vperm.xlu0 %1522, %v1548_v3  }
 0x895   : > { %1525 = vset.pattern.permute.xlu2 %v1698_v24  ;;  %v775_v24 = vpop.permute.xlu1 %774 }
 0x896   : > { %814 = vperm.xlu2 %1525, %v1549_v21  }
 0x899   : > { %1526 = vset.pattern.permute.xlu0 %v1670_v0 }
 0x89d   : > { %v812_v39 = vpop.permute.xlu1 %811 }
 0x89e   : > { %1527 = vset.pattern.permute.xlu2 %v1670_v0  ;;  %v743_v0 = vsel %vm739_vm8, %v1882_v29, 0.0  ;;  %vm737_vm8 = vcmp.eq.s32.totalorder %v732_v49, %v1861_v10  ;;  %vm816_vm6 = vcmp.eq.s32.totalorder %v812_v39, %v1857_v8 }
 0x89f   : > { %v747_v55 = vadd.f32 %v743_v0, %v742_v53  ;;  %v741_v23 = vsel %vm737_vm8, %v1865_v12, 0.0  ;;  %vm817_vm8 = vcmp.eq.s32.totalorder %v812_v39, %v1861_v10  ;;  %v820_v43 = vsel %vm816_vm6, %v1863_v11, 0.0 }
 0x8a0   : > { %v744_v26 = vadd.f32 %v741_v23, %v740_v22  ;;  %v821_v44 = vsel %vm817_vm8, %v1865_v12, 0.0 }
 0x8a1   : > { %v824_v47 = vadd.f32 %v821_v44, %v820_v43 }
 0x8ae   : > { %v706_v53 = vpop.xlane.xlu1 %705 }
 0x8bf   : > { %725 = vadd.xlane.f32.xlu2 %v724_v48 }
 0x8c7   : > { %748 = vadd.xlane.f32.xlu2 %v747_v55 }
 0x8d6   : > { %v686_v57 = vpop.xlane.xlu2 %685 }
 0x8d7   : > { %v2167_v58 = vsel %vm845_vm3, %v883_v56, %v686_v57 }
 0x8de   : > { %v689_v4 = vpop.xlane.xlu0 %688  ;;  %v715_v59 = vpop.permute.xlu2 %714 }
 0x8df   : > { %v2170_v60 = vsel %vm845_vm3, %v884_v34, %v689_v4  ;;  %vm718_vm0 = vcmp.eq.s32.totalorder %v715_v59, %v1857_v8  ;;  %vm719_vm15 = vcmp.eq.s32.totalorder %v715_v59, %v1861_v10 }
 0x8e0   : > { %v722_v61 = vsel %vm718_vm0, %v1880_v28, 0.0  ;;  %v723_v62 = vsel %vm719_vm15, %v1882_v29, 0.0  ;;  %vm758_vm0 = vcmp.eq.s32.totalorder %v755_v14, %v1857_v8 }
 0x8e1   : > { %v727_v63 = vadd.f32 %v723_v62, %v722_v61  ;;  %v762_v32 = vsel %vm758_vm0, %v1880_v28, 0.0 }
 0x8e3   : > { %728 = vadd.xlane.f32.xlu1 %v727_v63 }
 0x8e6   : > { %v772_v1 = vpop.permute.xlu2 %771 }
 0x8e7   : > { %vm776_vm14 = vcmp.eq.s32.totalorder %v772_v1, %v1857_v8  ;;  %vm777_vm7 = vcmp.eq.s32.totalorder %v772_v1, %v1861_v10 }
 0x8e8   : > { %v780_v2 = vsel %vm776_vm14, %v1863_v11, 0.0  ;;  %v781_v5 = vsel %vm777_vm7, %v1865_v12, 0.0  ;;  %vm759_vm7 = vcmp.eq.s32.totalorder %v755_v14, %v1861_v10 }
 0x8e9   : > { %v784_v6 = vadd.f32 %v781_v5, %v780_v2  ;;  %v763_v33 = vsel %vm759_vm7, %v1882_v29, 0.0  ;;  %vm2386_vm7 = vcmask 105472  }
 0x8ea   : > { %v767_v36 = vadd.f32 %v763_v33, %v762_v32 }
 0x8eb   : > { %785 = vadd.xlane.f32.xlu2 %v784_v6 }
 0x8ee   : > { %v795_v13 = vpop.permute.xlu2 %794 }
 0x8ef   : > { %vm798_vm3 = vcmp.eq.s32.totalorder %v795_v13, %v1857_v8  ;;  %vm799_vm10 = vcmp.eq.s32.totalorder %v795_v13, %v1861_v10 }
 0x8f0   : > { %v802_v15 = vsel %vm798_vm3, %v1880_v28, 0.0  ;;  %v803_v16 = vsel %vm799_vm10, %v1882_v29, 0.0  ;;  %vm778_vm3 = vcmp.eq.s32.totalorder %v775_v24, %v1857_v8  ;;  %vm779_vm10 = vcmp.eq.s32.totalorder %v775_v24, %v1861_v10 }
 0x8f1   : > { %v695_v18 = vpop.permute.xlu0 %694  ;;  %v807_v19 = vadd.f32 %v803_v16, %v802_v15  ;;  %v782_v34 = vsel %vm778_vm3, %v1880_v28, 0.0  ;;  %v783_v35 = vsel %vm779_vm10, %v1882_v29, 0.0  ;;  %vm909_vm3 = vcmask 130048  }
 0x8f2   : > { %vm698_vm11 = vcmp.eq.s32.totalorder %v695_v18, %v1857_v8  ;;  %vm699_vm5 = vcmp.eq.s32.totalorder %v695_v18, %v1861_v10  ;;  %v787_v37 = vadd.f32 %v783_v35, %v782_v34  ;;  %vm912_vm10 = vcmask 244736  }
 0x8f3   : > { %v702_v3 = vsel %vm698_vm11, %v1880_v28, 0.0  ;;  %v703_v20 = vsel %vm699_vm5, %v1882_v29, 0.0  ;;  %808 = vadd.xlane.f32.xlu2 %v807_v19 }
 0x8f4   : > { %v707_v21 = vadd.f32 %v703_v20, %v702_v3 }
 0x8f6   : > { %708 = vadd.xlane.f32.xlu0 %v707_v21  ;;  %v815_v45 = vpop.permute.xlu2 %814 }
 0x8f7   : > { %vm818_vm0 = vcmp.eq.s32.totalorder %v815_v45, %v1857_v8 }
 0x8f8   : > { %v822_v48 = vsel %vm818_vm0, %v1880_v28, 0.0 }
 0x8fa   : > { %v752_v25 = vpop.permute.xlu0 %751 }
 0x8fb   : > { %vm756_vm15 = vcmp.eq.s32.totalorder %v752_v25, %v1857_v8  ;;  %vm757_vm14 = vcmp.eq.s32.totalorder %v752_v25, %v1861_v10 }
 0x8fc   : > { %v760_v27 = vsel %vm756_vm15, %v1863_v11, 0.0  ;;  %v761_v30 = vsel %vm757_vm14, %v1865_v12, 0.0  ;;  %vm819_vm15 = vcmp.eq.s32.totalorder %v815_v45, %v1861_v10  ;;  %vm2385_vm14 = vcmask 97280  }
 0x8fd   : > { %v764_v31 = vadd.f32 %v761_v30, %v760_v27  ;;  %v823_v49 = vsel %vm819_vm15, %v1882_v29, 0.0  ;;  %v965_v45 = vstv %s1313_s29 }
 0x8fe   : > { %745 = vadd.xlane.f32.xlu0 %v744_v26  ;;  %v827_v51 = vadd.f32 %v823_v49, %v822_v48 }
 0x8ff   : > { %765 = vadd.xlane.f32.xlu1 %v764_v31 }
 0x903   : > { %v792_v38 = vpop.permute.xlu0 %791 }
 0x904   : > { %vm796_vm11 = vcmp.eq.s32.totalorder %v792_v38, %v1857_v8  ;;  %vm797_vm5 = vcmp.eq.s32.totalorder %v792_v38, %v1861_v10  ;;  %v887_v8 = vsel %vm848_vm12, %v2167_v58, %v706_v53 }
 0x905   : > { %v800_v40 = vsel %vm796_vm11, %v1863_v11, 0.0  ;;  %v801_v42 = vsel %vm797_vm5, %v1865_v12, 0.0  ;;  %vm2391_vm11 = vcmask 121856  }
 0x906   : > { %768 = vadd.xlane.f32.xlu0 %v767_v36  ;;  %v804_v46 = vadd.f32 %v801_v42, %v800_v40  ;;  %v962_v42 = vshrl.u32 %v227_v7, 7 }
 0x907   : > { %788 = vadd.xlane.f32.xlu1 %v787_v37 }
 0x908   : > { %v963_v44 = vadd.s32 8, %v962_v42  ;;  %v966_v48 = vadd.s32 %v965_v45, %v962_v42 }
 0x90a   : > { %vm968_vm0 = vcmp.lt.s32.totalorder %v966_v48, 24 }
 0x90e   : > { %805 = vadd.xlane.f32.xlu0 %v804_v46 }
 0x90f   : > { %825 = vadd.xlane.f32.xlu1 %v824_v47  ;;  %v967_v47 = vadd.s32 %v965_v45, %v963_v44 }
 0x911   : > { %vm969_vm6 = vcmp.lt.s32.totalorder %v967_v47, 24 }
 0x916   : > { %828 = vadd.xlane.f32.xlu0 %v827_v51 }
 0x932   : > { %v726_v54 = vpop.xlane.xlu2 %725 }
 0x933   : > { %v889_v10 = vsel %vm851_vm2, %v887_v8, %v726_v54 }
 0x93a   : > { %v749_v56 = vpop.xlane.xlu2 %748 }
 0x956   : > { %v729_v0 = vpop.xlane.xlu1 %728 }
 0x95e   : > { %v786_v59 = vpop.xlane.xlu2 %785 }
 0x966   : > { %v809_v14 = vpop.xlane.xlu2 %808 }
 0x969   : > { %v709_v11 = vpop.xlane.xlu0 %708 }
 0x96a   : > { %v888_v29 = vsel %vm848_vm12, %v2170_v60, %v709_v11  ;;  %vm2387_vm12 = vmmov %vm2385_vm14 }
 0x96b   : > { %v890_v62 = vsel %vm851_vm2, %v888_v29, %v729_v0  ;;  %vm2388_vm2 = vmmov %vm2386_vm7 }
 0x96c   : > { %v892_v2 = vsel %vm854_vm13, %v890_v62, %v749_v56 }
 0x971   : > { %v746_v12 = vpop.xlane.xlu0 %745 }
 0x972   : > { %v766_v55 = vpop.xlane.xlu1 %765  ;;  %v891_v28 = vsel %vm854_vm13, %v889_v10, %v746_v12  ;;  %vm2389_vm13 = vmmov %vm2388_vm2 }
 0x973   : > { %v893_v61 = vsel %vm857_vm1, %v891_v28, %v766_v55  ;;  %v867_v19 = vsel %vm2389_vm13, %v2028_v17, %v2051_v41 }
 0x974   : > { %v895_v63 = vsel %vm860_vm9, %v893_v61, %v786_v59 }
 0x979   : > { %v769_v57 = vpop.xlane.xlu0 %768 }
 0x97a   : > { %v789_v4 = vpop.xlane.xlu1 %788  ;;  %v894_v6 = vsel %vm857_vm1, %v892_v2, %v769_v57  ;;  %vm2390_vm1 = vcmask 113664  }
 0x97b   : > { %v896_v60 = vsel %vm860_vm9, %v894_v6, %v789_v4  ;;  %v870_v3 = vsel %vm2390_vm1, %v867_v19, %v2061_v50 }
 0x97c   : > { %v898_v15 = vsel %vm2387_vm12, %v896_v60, %v809_v14  ;;  %v873_v20 = vsel %vm2391_vm11, %v870_v3, %v2083_v9 }
 0x981   : > { %v806_v1 = vpop.xlane.xlu0 %805 }
 0x982   : > { %v897_v58 = vsel %vm2385_vm14, %v895_v63, %v806_v1  ;;  %v826_v5 = vpop.xlane.xlu1 %825 }
 0x983   : > { %v899_v13 = vsel %vm2386_vm7, %v897_v58, %v826_v5 }
 0x984   : > { %903 = vrot.lane.b32.xlu2 %v899_v13, %s1700_s19 }
 0x989   : > { %v829_v16 = vpop.xlane.xlu0 %828 }
 0x98a   : > { %v900_v18 = vsel %vm2388_vm2, %v898_v15, %v829_v16 }
 0x98b   : > { %905 = vrot.lane.b32.xlu1 %v900_v18, %s1700_s19 }
 0x9de   : > { %v904_v21 = vpop.permute.xlu2 %903 }
 0x9df   : > { %v2239_v22 = vsel %vm909_vm3, %v873_v20, %v904_v21 }
 0x9e0   : > { %v913_v23 = vsel %vm912_vm10, %v2239_v22, -inf }
 0x9e1   : > { %914 = vmax.xlane.f32.xlu0 %v913_v23 }
 0x9fd   : > { %v906_v24 = vpop.permute.xlu1 %905 }
 0x9fe   : > { %v2244_v25 = vsel %vm909_vm3, %v2064_v52, %v906_v24  ;;  %v1701_v52 = vmov 0.0  }
 0x9ff   : > { %946 = vperm.xlu2 %1527, %v2244_v25   ;;  %v916_v17 = vsel %vm912_vm10, %v2244_v25, -inf  ;;  %v2273_v51 = vsel %vm969_vm6, 1.0, %v1701_v52  ;;  %v1314_v12 = vsel %vm968_vm0, 1.0, %v1701_v52 }
 0xa00   : > { %917 = vmax.xlane.f32.xlu0 %v916_v17 }
 0xa14   : > { %941 = vperm.xlu0 %1526, %v2239_v22  }
 0xa54   : > { %v2250_v41 = vpop.xlane.xlu0 %914 }
 0xa55   : > { %v919_v50 = vsub.f32 %v2239_v22, %v2250_v41 }
 0xa57   : > { %v921_v9 = vmul.f32 1.442695, %v919_v50 }
 0xa59   : > { %1528 = vpow2.f32 %v921_v9  ;;  %v947_v26 = vpop.permute.xlu2 %946 }
 0xa5a   : > { %vm950_vm9 = vcmp.gt.f32.partialorder %v2244_v25, %v947_v26 }
 0xa5b   : > { %v1312_v27 = vsel %vm950_vm9, 1.0, %v1701_v52 }
 0xa5c   : > { %v958_v30 = vsel %vm912_vm10, %v1312_v27, 0.0 }
 0xa5d   : > { %959 = vadd.xlane.f32.xlu2 %v958_v30 }
 0xa5f   : > { %v1529_v31 = vpop.eup %1528 }
 0xa60   : > { %v925_v32 = vsel %vm912_vm10, %v1529_v31, 0.0 }
 0xa61   : > { %926 = vadd.xlane.f32.xlu0 %v925_v32 }
 0xa73   : > { %v2258_v33 = vpop.xlane.xlu0 %917 }
 0xa74   : > { %v920_v34 = vsub.f32 %v2244_v25, %v2258_v33 }
 0xa76   : > { %v923_v35 = vmul.f32 1.442695, %v920_v34 }
 0xa78   : > { %1530 = vpow2.f32 %v923_v35 }
 0xa7e   : > { %v1531_v39 = vpop.eup %1530 }
 0xa7f   : > { %v928_v40 = vsel %vm912_vm10, %v1531_v39, 0.0 }
 0xa86   : > { %v942_v36 = vpop.permute.xlu0 %941 }
 0xa87   : > { %vm949_vm5 = vcmp.gt.f32.partialorder %v2239_v22, %v942_v36 }
 0xa88   : > { %v1311_v37 = vsel %vm949_vm5, 1.0, %v1701_v52 }
 0xa89   : > { %v955_v38 = vsel %vm912_vm10, %v1311_v37, 0.0 }
 0xa8a   : > { %956 = vadd.xlane.f32.xlu1 %v955_v38 }
 0xa92   : > { %929 = vadd.xlane.f32.xlu1 %v928_v40 }
 0xad0   : > { %v2268_v43 = vpop.xlane.xlu2 %959 }
 0xad1   : > { %v975_v46 = vadd.f32 2.0, %v2268_v43  ;;  %vm989_vm8 = vcmp.lt.f32.partialorder %v2268_v43, 1.0  ;;  %vm1005_vm7 = vcmp.lt.f32.partialorder %v2268_v43, 5.0  ;;  %vm1013_vm2 = vcmp.lt.f32.partialorder %v2268_v43, 10.0 }
 0xad2   : > { %v1317_v53 = vsel %vm989_vm8, 1.0, %v1701_v52  ;;  %v1321_v59 = vsel %vm1005_vm7, 1.0, %v1701_v52  ;;  %v985_v60 = vadd.f32 1.0, %v2268_v43  ;;  %v1323_v19 = vsel %vm1013_vm2, 1.0, %v1701_v52 }
 0xad3   : > { %1532 = vlog2.f32 %v975_v46  ;;  %v995_v54 = vmul.f32 %v1317_v53, %v2273_v51  ;;  %v1011_v2 = vmul.f32 %v1321_v59, %v2273_v51  ;;  %v1019_v17 = vmul.f32 %v1323_v19, %v2273_v51 }
 0xad4   : > { %v927_v49 = vpop.xlane.xlu0 %926  ;;  %vm997_vm3 = vcmp.lt.f32.partialorder %v2268_v43, 3.0 }
 0xad5   : > { %1534 = vlog2.f32 %v927_v49  ;;  %v1022_v28 = vsel %vm830_vm4, %v995_v54, 0.0  ;;  %v1056_v16 = vsel %vm830_vm4, %v1011_v2, 0.0  ;;  %v1319_v34 = vsel %vm997_vm3, 1.0, %v1701_v52 }
 0xad6   : > { %v1090_v35 = vsel %vm830_vm4, %v1019_v17, 0.0  ;;  %v1003_v43 = vmul.f32 %v1319_v34, %v2273_v51 }
 0xad9   : > { %v1533_v7 = vpop.eup %1532 }
 0xada   : > { %v979_v56 = vmul.f32 0.6931472, %v1533_v7 }
 0xadb   : > { %v1535_v10 = vpop.eup %1534 }
 0xadc   : > { %v932_v62 = vmul.f32 0.6931472, %v1535_v10 }
 0xade   : > { %v935_v14 = vadd.f32 %v932_v62, %v2250_v41 }
 0xae0   : > { %v937_v23 = vsub.f32 %v935_v14, %v2239_v22 }
 0xae2   : > { %v1159_v22 = vmul.f32 %v1314_v12, %v937_v23 }
 0xae4   : > { %v1161_v45 = vsel %vm830_vm4, %v1159_v22, 0.0 }
 0xafd   : > { %v957_v0 = vpop.xlane.xlu1 %956 }
 0xafe   : > { %v974_v11 = vadd.f32 2.0, %v957_v0  ;;  %vm988_vm15 = vcmp.lt.f32.partialorder %v957_v0, 1.0  ;;  %vm1004_vm14 = vcmp.lt.f32.partialorder %v957_v0, 5.0  ;;  %vm1012_vm12 = vcmp.lt.f32.partialorder %v957_v0, 10.0 }
 0xaff   : > { %v1316_v55 = vsel %vm988_vm15, 1.0, %v1701_v52  ;;  %v1320_v57 = vsel %vm1004_vm14, 1.0, %v1701_v52  ;;  %v984_v58 = vadd.f32 1.0, %v957_v0  ;;  %v1322_v15 = vsel %vm1012_vm12, 1.0, %v1701_v52 }
 0xb00   : > { %1536 = vlog2.f32 %v974_v11  ;;  %v994_v8 = vmul.f32 %v1316_v55, %v1314_v12  ;;  %v1010_v61 = vmul.f32 %v1320_v57, %v1314_v12  ;;  %v1018_v20 = vmul.f32 %v1322_v15, %v1314_v12 }
 0xb01   : > { %1538 = vrcp.f32 %v979_v56  ;;  %vm996_vm13 = vcmp.lt.f32.partialorder %v957_v0, 3.0 }
 0xb02   : > { %v1021_v4 = vsel %vm830_vm4, %v994_v8, 0.0  ;;  %v1055_v6 = vsel %vm830_vm4, %v1010_v61, 0.0  ;;  %v1318_v9 = vsel %vm996_vm13, 1.0, %v1701_v52  ;;  %v1089_v26 = vsel %vm830_vm4, %v1018_v20, 0.0 }
 0xb03   : > { %v1023_v29 = vadd.f32 %v1022_v28, %v1021_v4  ;;  %v1057_v18 = vadd.f32 %v1056_v16, %v1055_v6  ;;  %v1002_v37 = vmul.f32 %v1318_v9, %v1314_v12  ;;  %v1091_v39 = vadd.f32 %v1090_v35, %v1089_v26 }
 0xb05   : > { %1024 = vadd.xlane.f32.xlu2 %v1023_v29  ;;  %v930_v63 = vpop.xlane.xlu1 %929 }
 0xb06   : > { %v1537_v1 = vpop.eup %1536  ;;  %1540 = vlog2.f32 %v930_v63 }
 0xb07   : > { %v977_v5 = vmul.f32 0.6931472, %v1537_v1  ;;  %v1539_v13 = vpop.eup %1538 }
 0xb08   : > { %v983_v21 = vmul.f32 0.6931472, %v1539_v13 }
 0xb09   : > { %1542 = vrcp.f32 %v977_v5 }
 0xb0a   : > { %1544 = vrcp.f32 %v984_v58  ;;  %v1038_v30 = vmul.f32 %v995_v54, %v983_v21  ;;  %v1072_v53 = vmul.f32 %v1011_v2, %v983_v21  ;;  %v1106_v55 = vmul.f32 %v1019_v17, %v983_v21 }
 0xb0b   : > { %1546 = vrcp.f32 %v985_v60 }
 0xb0c   : > { %v1541_v3 = vpop.eup %1540  ;;  %v1040_v42 = vsel %vm830_vm4, %v1038_v30, 0.0  ;;  %v1074_v11 = vsel %vm830_vm4, %v1072_v53, 0.0 }
 0xb0d   : > { %v934_v24 = vmul.f32 0.6931472, %v1541_v3  ;;  %1058 = vadd.xlane.f32.xlu2 %v1057_v18 }
 0xb0f   : > { %v1543_v41 = vpop.eup %1542  ;;  %v936_v50 = vadd.f32 %v934_v24, %v2258_v33 }
 0xb10   : > { %v982_v27 = vmul.f32 0.6931472, %v1543_v41  ;;  %v1545_v31 = vpop.eup %1544 }
 0xb11   : > { %v938_v32 = vsub.f32 %v936_v50, %v2244_v25  ;;  %v1547_v38 = vpop.eup %1546  ;;  %v1123_v44 = vmul.f32 %v1545_v31, %v1002_v37  ;;  %v1141_v10 = vmul.f32 %v1545_v31, %v1018_v20 }
 0xb12   : > { %v1037_v36 = vmul.f32 %v994_v8, %v982_v27  ;;  %v1124_v47 = vmul.f32 %v1547_v38, %v1003_v43  ;;  %v1071_v48 = vmul.f32 %v1010_v61, %v982_v27  ;;  %v1105_v12 = vmul.f32 %v1018_v20, %v982_v27 }
 0xb13   : > { %v1160_v33 = vmul.f32 %v2273_v51, %v938_v32  ;;  %v1125_v49 = vsel %vm830_vm4, %v1123_v44, 0.0  ;;  %v1108_v8 = vsel %vm830_vm4, %v1106_v55, 0.0  ;;  %v1142_v4 = vmul.f32 %v1547_v38, %v1019_v17 }
 0xb14   : > { %v1039_v40 = vsel %vm830_vm4, %v1037_v36, 0.0  ;;  %v1126_v7 = vsel %vm830_vm4, %v1124_v47, 0.0  ;;  %v1073_v0 = vsel %vm830_vm4, %v1071_v48, 0.0  ;;  %v1107_v56 = vsel %vm830_vm4, %v1105_v12, 0.0 }
 0xb15   : > { %1092 = vadd.xlane.f32.xlu2 %v1091_v39  ;;  %v1041_v25 = vadd.f32 %v1040_v42, %v1039_v40  ;;  %v1162_v52 = vsel %vm830_vm4, %v1160_v33, 0.0  ;;  %v1127_v51 = vadd.f32 %v1126_v7, %v1125_v49  ;;  %v1075_v54 = vadd.f32 %v1074_v11, %v1073_v0 }
 0xb16   : > { %v1163_v46 = vadd.f32 %v1162_v52, %v1161_v45  ;;  %v1109_v57 = vadd.f32 %v1108_v8, %v1107_v56  ;;  %v1143_v28 = vsel %vm830_vm4, %v1141_v10, 0.0  ;;  %v1144_v29 = vsel %vm830_vm4, %v1142_v4, 0.0 }
 0xb17   : > { %1042 = vadd.xlane.f32.xlu1 %v1041_v25  ;;  %v1145_v59 = vadd.f32 %v1144_v29, %v1143_v28 }
 0xb18   : > { %1164 = vadd.xlane.f32.xlu0 %v1163_v46 }
 0xb1d   : > { %1128 = vadd.xlane.f32.xlu2 %v1127_v51 }
 0xb1f   : > { %1076 = vadd.xlane.f32.xlu1 %v1075_v54 }
 0xb27   : > { %1110 = vadd.xlane.f32.xlu1 %v1109_v57 }
 0xb2f   : > { %1146 = vadd.xlane.f32.xlu1 %v1145_v59 }
 0xb78   : > { %v1025_v61 = vpop.xlane.xlu2 %1024 }
 0xb79   : > { %v1026_v62 = vrot.slane %v1025_v61, 4 }
 0xb7b   : > { %v1027_v63 = vadd.f32 %v1026_v62, %v1025_v61 }
 0xb7d   : > { %v1028_v1 = vrot.slane %v1027_v63, 2 }
 0xb7f   : > { %v1029_v2 = vadd.f32 %v1028_v1, %v1027_v63 }
 0xb80   : > { %v1059_v58 = vpop.xlane.xlu2 %1058 }
 0xb81   : > { %v1030_v5 = vrot.slane %v1029_v2, 1  ;;  %v1060_v6 = vrot.slane %v1059_v58, 4 }
 0xb83   : > { %v1031_v13 = vadd.f32 %v1030_v5, %v1029_v2  ;;  %v1061_v60 = vadd.f32 %v1060_v6, %v1059_v58 }
 0xb85   : > { %1348 = vpush %v1031_v13  ;;  %v1062_v15 = vrot.slane %v1061_v60, 2 }
 0xb87   : > { %v1063_v21 = vadd.f32 %v1062_v15, %v1061_v60 }
 0xb88   : > { %v1093_v14 = vpop.xlane.xlu2 %1092 }
 0xb89   : > { %v1094_v16 = vrot.slane %v1093_v14, 4  ;;  %v1064_v26 = vrot.slane %v1063_v21, 1 }
 0xb8a   : > { %v1043_v18 = vpop.xlane.xlu1 %1042 }
 0xb8b   : > { %v1044_v19 = vrot.slane %v1043_v18, 4  ;;  %v1095_v20 = vadd.f32 %v1094_v16, %v1093_v14  ;;  %v1065_v34 = vadd.f32 %v1064_v26, %v1063_v21  ;;  %v1165_v36 = vpop.xlane.xlu0 %1164 }
 0xb8c   : > { %v1166_v39 = vrot.slane %v1165_v36, 4 }
 0xb8d   : > { %v1045_v3 = vadd.f32 %v1044_v19, %v1043_v18  ;;  %v1096_v41 = vrot.slane %v1095_v20, 2 }
 0xb8e   : > { %v1167_v52 = vadd.f32 %v1166_v39, %v1165_v36 }
 0xb8f   : > { %v1046_v23 = vrot.slane %v1045_v3, 2  ;;  %v1097_v35 = vadd.f32 %v1096_v41, %v1095_v20 }
 0xb90   : > { %v1129_v24 = vpop.xlane.xlu2 %1128  ;;  %v1168_v53 = vrot.slane %v1167_v52, 2 }
 0xb91   : > { %v1047_v17 = vadd.f32 %v1046_v23, %v1045_v3  ;;  %v1130_v50 = vrot.slane %v1129_v24, 4  ;;  %v1098_v42 = vrot.slane %v1097_v35, 1 }
 0xb92   : > { %v1077_v9 = vpop.xlane.xlu1 %1076  ;;  %v1169_v55 = vadd.f32 %v1168_v53, %v1167_v52 }
 0xb93   : > { %v1078_v27 = vrot.slane %v1077_v9, 4  ;;  %v1048_v30 = vrot.slane %v1047_v17, 1  ;;  %v1131_v22 = vadd.f32 %v1130_v50, %v1129_v24  ;;  %v1099_v47 = vadd.f32 %v1098_v42, %v1097_v35 }
 0xb94   : > { %v1170_v10 = vrot.slane %v1169_v55, 1 }
 0xb95   : > { %v1079_v31 = vadd.f32 %v1078_v27, %v1077_v9  ;;  %v1049_v32 = vadd.f32 %v1048_v30, %v1047_v17  ;;  %v1132_v33 = vrot.slane %v1131_v22, 2 }
 0xb96   : > { %v1171_v29 = vadd.f32 %v1170_v10, %v1169_v55 }
 0xb97   : > { %v1080_v37 = vrot.slane %v1079_v31, 2  ;;  %1350 = vpush %v1049_v32  ;;  %v1133_v46 = vadd.f32 %v1132_v33, %v1131_v22 }
 0xb98   : > { %1352 = vpush %v1065_v34 }
 0xb99   : > { %v1081_v38 = vadd.f32 %v1080_v37, %v1079_v31  ;;  %v1134_v0 = vrot.slane %v1133_v46, 1 }
 0xb9a   : > { %v1111_v40 = vpop.xlane.xlu1 %1110 }
 0xb9b   : > { %v1112_v43 = vrot.slane %v1111_v40, 4  ;;  %v1082_v44 = vrot.slane %v1081_v38, 1  ;;  %v1135_v56 = vadd.f32 %v1134_v0, %v1133_v46 }
 0xb9d   : > { %v1113_v25 = vadd.f32 %v1112_v43, %v1111_v40  ;;  %v1083_v45 = vadd.f32 %v1082_v44, %v1081_v38 }
 0xb9f   : > { %v1114_v48 = vrot.slane %v1113_v25, 2  ;;  %1354 = vpush %v1083_v45 }
 0xba0   : > { %1356 = vpush %v1099_v47 }
 0xba1   : > { %v1115_v49 = vadd.f32 %v1114_v48, %v1113_v25 }
 0xba2   : > { %v1147_v7 = vpop.xlane.xlu1 %1146 }
 0xba3   : > { %v1148_v51 = vrot.slane %v1147_v7, 4  ;;  %v1116_v11 = vrot.slane %v1115_v49, 1 }
 0xba5   : > { %v1149_v54 = vadd.f32 %v1148_v51, %v1147_v7  ;;  %v1117_v12 = vadd.f32 %v1116_v11, %v1115_v49 }
 0xba7   : > { %v1150_v8 = vrot.slane %v1149_v54, 2  ;;  %1358 = vpush %v1117_v12 }
 0xba8   : > { %1360 = vpush %v1135_v56 }
 0xba9   : > { %v1151_v57 = vadd.f32 %v1150_v8, %v1149_v54 }
 0xbab   : > { %v1152_v4 = vrot.slane %v1151_v57, 1 }
 0xbad   : > { %v1153_v28 = vadd.f32 %v1152_v4, %v1151_v57 }
 0xbaf   : > { %1362 = vpush %v1153_v28 }
 0xbb0   : > { %1364 = vpush %v1171_v29 }
 0xbb6   : > { %s1349_s24 = spop %1348 }
 0xbb7   : > { %s1033_s25 = sadd.f32 %s1349_s24, %s1020_s16 }
 0xbb8   : > { %s1331_s24 = sld [smem:[#allocation2 + $0x8]] }
 0xbb9   : > { %1035 = sst [smem:[#allocation2]] %s1033_s25  ;;  %s1181_s26 = smul.f32 0.041666668, %s1033_s25 }
 0xbbb   : > { %1381 = sst [smem:[#allocation8]] (%p1403_p5), %s1181_s26 }
 0xbc8   : > { %s1351_s6 = spop %1350 }
 0xbc9   : > { %s1051_s12 = sadd.f32 %s1351_s6, %s1324_s3  ;;  %s1353_s22 = spop %1352 }
 0xbca   : > { %s1067_s28 = sadd.f32 %s1353_s22, %s1325_s4 }
 0xbcb   : > { %1053 = sst [smem:[#allocation2 + $0x1]] %s1051_s12  ;;  %s1185_s30 = smul.f32 0.041666668, %s1051_s12 }
 0xbcc   : > { %1069 = sst [smem:[#allocation2 + $0x2]] %s1067_s28  ;;  %s1189_s7 = smul.f32 0.041666668, %s1067_s28 }
 0xbcd   : > { %1382 = sst [smem:[#allocation8 + $0x1]] (%p1403_p5), %s1185_s30  ;;  %s1222_s12 = sshll.u32 %s2376_s2, 4  ;;  %s1223_s12 = int_to_ptr.hbm [resolvable:$true] %s1222_s12 }
 0xbce   : > { %1383 = sst [smem:[#allocation8 + $0x2]] (%p1403_p5), %s1189_s7 }
 0xbd0   : > { %s1355_s21 = spop %1354 }
 0xbd1   : > { %s1085_s9 = sadd.f32 %s1355_s21, %s1326_s5  ;;  %s1357_s18 = spop %1356 }
 0xbd2   : > { %s1101_s23 = sadd.f32 %s1357_s18, %s1327_s27 }
 0xbd3   : > { %1087 = sst [smem:[#allocation2 + $0x3]] %s1085_s9  ;;  %s1193_s19 = smul.f32 0.041666668, %s1085_s9 }
 0xbd4   : > { %1103 = sst [smem:[#allocation2 + $0x4]] %s1101_s23  ;;  %s1197_s29 = smul.f32 0.041666668, %s1101_s23 }
 0xbd5   : > { %1384 = sst [smem:[#allocation8 + $0x3]] (%p1403_p5), %s1193_s19 }
 0xbd6   : > { %1385 = sst [smem:[#allocation8 + $0x4]] (%p1403_p5), %s1197_s29 }
 0xbd8   : > { %s1359_s16 = spop %1358 }
 0xbd9   : > { %s1119_s25 = sadd.f32 %s1359_s16, %s1328_s20  ;;  %s1361_s26 = spop %1360 }
 0xbda   : > { %s1137_s3 = sadd.f32 %s1361_s26, %s1329_s8  ;;  %s1703_s8 = smov [#allocation8]  }
 0xbdb   : > { %1121 = sst [smem:[#allocation2 + $0x5]] %s1119_s25  ;;  %s1201_s4 = smul.f32 0.041666668, %s1119_s25 }
 0xbdc   : > { %1139 = sst [smem:[#allocation2 + $0x6]] %s1137_s3  ;;  %s1205_s5 = smul.f32 0.041666668, %s1137_s3 }
 0xbdd   : > { %1386 = sst [smem:[#allocation8 + $0x5]] (%p1403_p5), %s1201_s4 }
 0xbde   : > { %1387 = sst [smem:[#allocation8 + $0x6]] (%p1403_p5), %s1205_s5 }
 0xbe0   : > { %s1363_s22 = spop %1362 }
 0xbe1   : > { %s1155_s28 = sadd.f32 %s1363_s22, %s1330_s15  ;;  %s1365_s30 = spop %1364 }
 0xbe2   : > { %s1173_s7 = sadd.f32 %s1365_s30, %s1331_s24 }
 0xbe3   : > { %1157 = sst [smem:[#allocation2 + $0x7]] %s1155_s28  ;;  %s1209_s20 = smul.f32 0.041666668, %s1155_s28 }
 0xbe4   : > { %1175 = sst [smem:[#allocation2 + $0x8]] %s1173_s7  ;;  %s1213_s21 = smul.f32 0.041666668, %s1173_s7 }
 0xbe5   : > { %1388 = sst [smem:[#allocation8 + $0x7]] (%p1403_p5), %s1209_s20 }
 0xbe6   : > { %1389 = sst [smem:[#allocation8 + $0x8]] (%p1403_p5), %s1213_s21 }
 0xbe7   : > { %1391 = dma.smem_to_hbm (%p1403_p5), %s1703_s8, 16, %s1223_s12, [#allocation5]  }
 0xbe8   : > { %1649 = dma.done.wait (%p1403_p5), [#allocation5], 16  }
 0xbe9   : > { %1651 = vsyncadd (%p1403_p5), [#allocation5], 4294967280 }
 0xbea   : > { %1231 = sfence }
 0xbeb PF: > { %p16_p7 = scmp.ge.s32.totalorder %s1741_s14, 4   ;;  %s2392_s9 = smov %s1658_s10 }
 0xbec   : > { %s2393_s10 = smov %s1662_s11  ;;  %s2394_s11 = smov %s1751_s17 }
 0xbed   : > { %s2395_s12 = smov %s1741_s14  ;;  %18 = sbr.rel (!%p16_p7) target bundleno = 6 (0x6), region = 113 }
 0xbf2   :  { %1237 = vsyncpa [#allocation4], 1 }
 0xbf3   :  { %1239 = vsyncpa [#allocation4 + $0x1], 1 }
 0xbf4   :  { %1240 = vsyncpa [#allocation7], 1 }
 0xbf5   :  { %1242 = vsyncpa [#allocation7 + $0x1], 1 }
 0xbf6   :  { %1243 = vsyncpa [#allocation5], 1 }
 0xbf7   :  { %1245 = vsyncpa [#allocation5 + $0x1], 1 }

</bundles_post_ra>
